<compile_context>
chip_gen: v5e
topology: v5e:2x2
jax: 0.10.0
libtpu: 0.0.40
codegen_flags: <defaults>
</compile_context>

<pallas_src>
import numpy as np
import jax
import jax.numpy as jnp
from jax.experimental import pallas as pl
from jax.experimental.pallas import tpu as pltpu


VMEM_SPEC = pl.BlockSpec(memory_space=pltpu.MemorySpace.VMEM)


def make_lstnet_forward(B, P, m1, m2, m3, hidC, hidR, hidS, Ck, skip, hw):
    M = m1 * m2 * m3
    K_in = P * M                 # flattened conv input per sample
    Cout = P * hidC * Ck         # conv output channels (kernel == full extent)
    T = P - Ck + 1               # temporal length after the diagonal sum
    pt = (P - Ck) // skip
    Hs = skip * hidS             # skip-GRU hidden, vectorized over `skip`
    off = T - pt * skip          # first timestep used by the skip GRU
    G = hidR + Hs                # merged (main + skip) hidden width
    GP = 128                     # per-gate column group of Whh (vreg aligned)
    Bp = max(8, -(-B // 8) * 8)  # batch padded to full sublane groups

    # ---------------- fused kernel ----------------
    def kernel(x_ref, cw_ref, cb_ref, ssum_ref, wbd_ref, bgi_ref,
               whh_ref, bhhn_ref, w1t_ref, hsel_ref, bhead_ref, o_ref):
        x = x_ref[...]                                            # (Bp, K_in) f32
        x_bf = x.astype(jnp.bfloat16)

        # Conv3d(kernel == full spatial extent) + bias + ReLU  ==  matmul.
        c_flat = jnp.maximum(
            jnp.dot(x_bf, cw_ref[...], preferred_element_type=jnp.float32)
            + cb_ref[...], 0.0)                                   # (Bp, Cout)

        # Diagonal temporal sum (the python triple loop of the reference) as
        # one MXU matmul against a 0/1 selection matrix (exact in bf16):
        # cmat[b, t*hidC + ch] = sum_begin c[b, ch, begin, begin + t]
        cmat = jnp.dot(c_flat.astype(jnp.bfloat16), ssum_ref[...],
                       preferred_element_type=jnp.float32)        # (Bp, T*hidC)
        # dropout(p=0.2) -> identity at inference.

        # ALL GRU input projections in ONE matmul (main GRU, every step, plus
        # the skip GRU merged into the last `pt` steps).  ih biases and the
        # r/z hh biases are already folded into bgi.
        gi = jnp.dot(cmat.astype(jnp.bfloat16), wbd_ref[...],
                     preferred_element_type=jnp.float32) + bgi_ref[...]
                                                                  # (Bp, T*3*G)

        whh = whh_ref[...]                                        # (G, 3*GP) bf16
        bhhn_act = bhhn_ref[0:1, :]                               # skip active
        bhhn_ina = bhhn_ref[1:2, :]                               # skip inactive

        # Merged recurrence: hidden = [main(hidR) | skip(skip*hidS)].  The
        # skip part stays exactly 0 until its steps activate (its gi/weight
        # columns are zero before step T-pt), so it reproduces GRUskip.
        h = jnp.zeros((Bp, G), jnp.float32)
        for t in range(T):
            base = t * 3 * G
            gi_r = gi[:, base:base + G]
            gi_z = gi[:, base + G:base + 2 * G]
            gi_n = gi[:, base + 2 * G:base + 3 * G]
            # Single hidden->hidden matmul on the serial path; its gate
            # slices are vreg-prefix aligned (columns 0 / 128 / 256).
            gh = jnp.dot(h.astype(jnp.bfloat16), whh,
                         preferred_element_type=jnp.float32)      # (Bp, 3*GP)
            bhh_n = bhhn_act if t >= T - pt else bhhn_ina
            r = jax.nn.sigmoid(gi_r + gh[:, 0:G])
            z = jax.nn.sigmoid(gi_z + gh[:, GP:GP + G])
            n = jnp.tanh(gi_n + r * (gh[:, 2 * GP:2 * GP + G] + bhh_n))
            h = (1.0 - z) * n + z * h

        # Head: linear1([h_main, h_skip]) + highway(x) + sigmoid.
        lin = jnp.dot(h.astype(jnp.bfloat16), w1t_ref[...],
                      preferred_element_type=jnp.float32)
        hwy = jnp.dot(x_bf, hsel_ref[...], preferred_element_type=jnp.float32)
        o_ref[...] = jax.nn.sigmoid(lin + hwy + bhead_ref[...])

    pcall = pl.pallas_call(
        kernel,
        out_shape=jax.ShapeDtypeStruct((Bp, M), jnp.float32),
        in_specs=[VMEM_SPEC] * 11,
        out_specs=VMEM_SPEC,
    )
    # TODO(synk): if batch ever grows large, add grid=(Bp//bt,) over batch with
    # dimension_semantics=("parallel",) so v7x's second TensorCore is used.

    # -------- one-time parameter preparation (layouts / folded matrices) -----
    def prepare_params(conv_w, conv_b, gru1_wih, gru1_whh, gru1_bih, gru1_bhh,
                       grus_wih, grus_whh, grus_bih, grus_bhh,
                       lin1_w, lin1_b, hwy_w, hwy_b):
        f32 = np.float32
        conv_wt = np.asarray(conv_w, f32).reshape(Cout, K_in).T     # (K_in, Cout)
        conv_bb = np.asarray(conv_b, f32).reshape(1, Cout)

        # 0/1 selection matrix implementing the diagonal temporal sum.
        s_sum = np.zeros((Cout, T * hidC), f32)
        for ch in range(hidC):
            for begin in range(Ck):
                for t in range(T):
                    s_sum[ch * Ck * P + begin * P + begin + t,
                          t * hidC + ch] = 1.0

        wih_m = np.asarray(gru1_wih, f32)    # (3*hidR, hidC), gate order r,z,n
        whh_m = np.asarray(gru1_whh, f32)    # (3*hidR, hidR)
        bih_m = np.asarray(gru1_bih, f32)
        bhh_m = np.asarray(gru1_bhh, f32)
        wih_s = np.asarray(grus_wih, f32)    # (3*hidS, hidC)
        whh_s = np.asarray(grus_whh, f32)    # (3*hidS, hidS)
        bih_s = np.asarray(grus_bih, f32)
        bhh_s = np.asarray(grus_bhh, f32)

        # Block-diagonal input-projection weight covering all T steps of the
        # merged recurrence; per-step column block is 3*G wide, gate-major
        # (r,z,n); within a gate: [main hidR | skip j*hidS+f].  ih biases and
        # the r/z hh biases are folded into bgi.
        wbd = np.zeros((T * hidC, T * 3 * G), f32)
        bgi = np.zeros((1, T * 3 * G), f32)
        for t in range(T):
            for g in range(3):
                col0 = t * 3 * G + g * G
                # main GRU, step t
                wbd[t * hidC:(t + 1) * hidC, col0:col0 + hidR] = \
                    wih_m[g * hidR:(g + 1) * hidR, :].T
                bgi[0, col0:col0 + hidR] = bih_m[g * hidR:(g + 1) * hidR]
                if g < 2:
                    bgi[0, col0:col0 + hidR] += bhh_m[g * hidR:(g + 1) * hidR]
                # skip GRU, merged into the last `pt` main steps
                i = t - (T - pt)
                if i >= 0:
                    for j in range(skip):
                        tau = off + i * skip + j
                        c0 = col0 + hidR + j * hidS
                        wbd[tau * hidC:(tau + 1) * hidC, c0:c0 + hidS] = \
                            wih_s[g * hidS:(g + 1) * hidS, :].T
                        bgi[0, c0:c0 + hidS] = bih_s[g * hidS:(g + 1) * hidS]
                        if g < 2:
                            bgi[0, c0:c0 + hidS] += bhh_s[g * hidS:(g + 1) * hidS]

        # Block-diagonal hidden->hidden weight; each gate padded to a 128-lane
        # column group so in-kernel gate slices of gh are vreg-prefix aligned.
        whh = np.zeros((G, 3 * GP), f32)
        for g in range(3):
            whh[0:hidR, g * GP:g * GP + hidR] = whh_m[g * hidR:(g + 1) * hidR, :].T
            for j in range(skip):
                r0 = hidR + j * hidS
                whh[r0:r0 + hidS, g * GP + r0:g * GP + r0 + hidS] = \
                    whh_s[g * hidS:(g + 1) * hidS, :].T

        # n-gate hh bias (stays inside the r*(...) term); row 0 = skip steps
        # active, row 1 = skip part zeroed (keeps the skip hidden at 0).
        bhhn = np.zeros((2, G), f32)
        bhhn[0, :hidR] = bhh_m[2 * hidR:3 * hidR]
        bhhn[1, :hidR] = bhh_m[2 * hidR:3 * hidR]
        for j in range(skip):
            bhhn[0, hidR + j * hidS:hidR + (j + 1) * hidS] = bhh_s[2 * hidS:3 * hidS]

        # Head: linear1 over the merged hidden [h_main | h_skip] and highway
        # as a matmul against the flattened input; biases folded together.
        w1t = np.asarray(lin1_w, f32).T                             # (G, M)
        b_head = (np.asarray(lin1_b, f32)
                  + np.asarray(hwy_b, f32)[0]).reshape(1, M)
        h_sel = np.zeros((K_in, M), f32)
        hwy_wn = np.asarray(hwy_w, f32).reshape(hw)
        for t in range(hw):
            for m in range(M):
                h_sel[(P - hw + t) * M + m, m] = hwy_wn[t]

        bf = jnp.bfloat16
        return (jnp.asarray(conv_wt, bf), jnp.asarray(conv_bb),
                jnp.asarray(s_sum, bf), jnp.asarray(wbd, bf), jnp.asarray(bgi),
                jnp.asarray(whh, bf), jnp.asarray(bhhn),
                jnp.asarray(w1t, bf), jnp.asarray(h_sel, bf),
                jnp.asarray(b_head))

    @jax.jit
    def forward(x, params):
        x_flat = x.reshape(B, K_in).astype(jnp.float32)
        x_pad = jnp.zeros((Bp, K_in), jnp.float32).at[:B].set(x_flat)
        res = pcall(x_pad, *params)
        return res[:B].reshape(B, m1, m2, m3)

    return prepare_params, forward


# ---------------- driver ----------------

if __name__ == "__main__":
    # Small, self-consistent hyperparameters implied by the module.
    B = 2                      # batch
    P = 8                      # args.window
    m1, m2, m3 = 2, 2, 4
    M = m1 * m2 * m3           # 16
    hidC, hidR, hidS = 8, 16, 4
    Ck = 4                     # args.CNN_kernel
    skip = 2
    pt = (P - Ck) // skip      # 2
    hw = 4                     # args.highway_window
    T = P - Ck + 1             # 5
    K_in = P * m1 * m2 * m3    # 128
    Cout = P * hidC * Ck       # 256

    key = jax.random.PRNGKey(0)
    ks = jax.random.split(key, 16)

    def rnd(k, shape, scale=0.1):
        return scale * jax.random.normal(k, shape, dtype=jnp.float32)

    x = rnd(ks[0], (B, P, m1, m2, m3), 1.0)

    conv_w = rnd(ks[1], (Cout, P, m1, m2, m3))
    conv_b = rnd(ks[2], (Cout,))
    gru1_wih = rnd(ks[3], (3 * hidR, hidC))
    gru1_whh = rnd(ks[4], (3 * hidR, hidR))
    gru1_bih = rnd(ks[5], (3 * hidR,))
    gru1_bhh = rnd(ks[6], (3 * hidR,))
    grus_wih = rnd(ks[7], (3 * hidS, hidC))
    grus_whh = rnd(ks[8], (3 * hidS, hidS))
    grus_bih = rnd(ks[9], (3 * hidS,))
    grus_bhh = rnd(ks[10], (3 * hidS,))
    lin1_w = rnd(ks[11], (M, hidR + skip * hidS))
    lin1_b = rnd(ks[12], (M,))
    hwy_w = rnd(ks[13], (1, hw))
    hwy_b = rnd(ks[14], (1,))

    # ---------- fused Pallas forward ----------
    prepare_params, forward_pallas = make_lstnet_forward(
        B, P, m1, m2, m3, hidC, hidR, hidS, Ck, skip, hw)
    params = prepare_params(conv_w, conv_b,
                            gru1_wih, gru1_whh, gru1_bih, gru1_bhh,
                            grus_wih, grus_whh, grus_bih, grus_bhh,
                            lin1_w, lin1_b, hwy_w, hwy_b)

    # ---------- pure-JAX f32 reference (for a correctness check) ----------
    def gru_last_hidden(x_seq, wih, whh, bih, bhh):
        Tn = x_seq.shape[0]
        H = whh.shape[1]
        h = jnp.zeros((x_seq.shape[1], H), jnp.float32)
        for t in range(Tn):
            gi = x_seq[t] @ wih.T + bih
            gh = h @ whh.T + bhh
            r = jax.nn.sigmoid(gi[:, :H] + gh[:, :H])
            z = jax.nn.sigmoid(gi[:, H:2 * H] + gh[:, H:2 * H])
            n = jnp.tanh(gi[:, 2 * H:] + r * gh[:, 2 * H:])
            h = (1.0 - z) * n + z * h
        return h

    def forward_ref(x):
        c_flat = jnp.maximum(
            x.reshape(B, K_in) @ conv_w.reshape(Cout, K_in).T + conv_b, 0.0)
        c4 = c_flat.reshape(B, hidC, Ck, P)
        c = jnp.zeros((B, hidC, T), jnp.float32)
        for begin in range(Ck):
            c = c + c4[:, :, begin, begin:begin + T]
        h_main = gru_last_hidden(jnp.transpose(c, (2, 0, 1)),
                                 gru1_wih, gru1_whh, gru1_bih, gru1_bhh)
        s = c[:, :, -pt * skip:].reshape(B, hidC, pt, skip)
        s = jnp.transpose(s, (2, 0, 3, 1)).reshape(pt, B * skip, hidC)
        h_skip = gru_last_hidden(s, grus_wih, grus_whh,
                                 grus_bih, grus_bhh).reshape(B, skip * hidS)
        r = jnp.concatenate([h_main, h_skip], axis=1)
        res = r @ lin1_w.T + lin1_b
        z = jnp.transpose(x[:, -hw:], (0, 2, 3, 4, 1)).reshape(-1, hw)
        z = z @ hwy_w.T + hwy_b
        res = jax.nn.sigmoid(res + z.reshape(B, M))
        return res.reshape(B, m1, m2, m3)

    out = jax.block_until_ready(forward_pallas(x, params))
    ref = jax.block_until_ready(forward_ref(x))
    assert out.shape == (B, m1, m2, m3)
    # bf16 weights -> slightly relaxed (but still meaningful) tolerance.
    assert jnp.allclose(out, ref, rtol=2e-2, atol=1e-2), "mismatch vs reference"
    print("KERNEL_OK")
</pallas_src>

<mosaic_0001>
module attributes {stable_mosaic.version = 11 : i64} {
  func.func @kernel(%arg0: memref<8x128xf32, #tpu.memory_space<vmem>>, %arg1: memref<128x256xbf16, #tpu.memory_space<vmem>>, %arg2: memref<1x256xf32, #tpu.memory_space<vmem>>, %arg3: memref<256x40xbf16, #tpu.memory_space<vmem>>, %arg4: memref<40x360xbf16, #tpu.memory_space<vmem>>, %arg5: memref<1x360xf32, #tpu.memory_space<vmem>>, %arg6: memref<24x384xbf16, #tpu.memory_space<vmem>>, %arg7: memref<2x24xf32, #tpu.memory_space<vmem>>, %arg8: memref<24x16xbf16, #tpu.memory_space<vmem>>, %arg9: memref<128x16xbf16, #tpu.memory_space<vmem>>, %arg10: memref<1x16xf32, #tpu.memory_space<vmem>>, %arg11: memref<8x16xf32, #tpu.memory_space<vmem>>) attributes {dimension_semantics = [], scalar_prefetch = 0 : i64, scratch_operands = 0 : i64, tpu.core_type = #tpu.core_type<tc>} {
    %c0 = arith.constant 0 : index
    %c0_0 = arith.constant 0 : index
    %0 = vector.load %arg0[%c0, %c0_0] : memref<8x128xf32, #tpu.memory_space<vmem>>, vector<8x128xf32>
    %1 = arith.truncf %0 : vector<8x128xf32> to vector<8x128xbf16>
    %c0_1 = arith.constant 0 : index
    %c0_2 = arith.constant 0 : index
    %2 = vector.load %arg1[%c0_1, %c0_2] : memref<128x256xbf16, #tpu.memory_space<vmem>>, vector<128x256xbf16>
    %cst = arith.constant dense<0.000000e+00> : vector<8x256xf32>
    %3 = tpu.matmul %1, %2, %cst {dimension_numbers = #tpu.dot_dimension_numbers<[1], [0], [0], [1], [0, 0, 1, 1], [], []>} : vector<8x128xbf16>, vector<128x256xbf16>, vector<8x256xf32> -> vector<8x256xf32>
    %c0_3 = arith.constant 0 : index
    %c0_4 = arith.constant 0 : index
    %4 = vector.load %arg2[%c0_3, %c0_4] : memref<1x256xf32, #tpu.memory_space<vmem>>, vector<1x256xf32>
    %5 = vector.broadcast %4 : vector<1x256xf32> to vector<8x256xf32>
    %6 = arith.addf %3, %5 : vector<8x256xf32>
    %cst_5 = arith.constant 0.000000e+00 : f32
    %7 = vector.broadcast %cst_5 : f32 to vector<8x256xf32>
    %8 = arith.maximumf %6, %7 : vector<8x256xf32>
    %9 = arith.truncf %8 : vector<8x256xf32> to vector<8x256xbf16>
    %c0_6 = arith.constant 0 : index
    %c0_7 = arith.constant 0 : index
    %10 = vector.load %arg3[%c0_6, %c0_7] : memref<256x40xbf16, #tpu.memory_space<vmem>>, vector<256x40xbf16>
    %cst_8 = arith.constant dense<0.000000e+00> : vector<8x40xf32>
    %11 = tpu.matmul %9, %10, %cst_8 {dimension_numbers = #tpu.dot_dimension_numbers<[1], [0], [0], [1], [0, 0, 1, 1], [], []>} : vector<8x256xbf16>, vector<256x40xbf16>, vector<8x40xf32> -> vector<8x40xf32>
    %12 = arith.truncf %11 : vector<8x40xf32> to vector<8x40xbf16>
    %c0_9 = arith.constant 0 : index
    %c0_10 = arith.constant 0 : index
    %13 = vector.load %arg4[%c0_9, %c0_10] : memref<40x360xbf16, #tpu.memory_space<vmem>>, vector<40x360xbf16>
    %cst_11 = arith.constant dense<0.000000e+00> : vector<8x360xf32>
    %14 = tpu.matmul %12, %13, %cst_11 {dimension_numbers = #tpu.dot_dimension_numbers<[1], [0], [0], [1], [0, 0, 1, 1], [], []>} : vector<8x40xbf16>, vector<40x360xbf16>, vector<8x360xf32> -> vector<8x360xf32>
    %c0_12 = arith.constant 0 : index
    %c0_13 = arith.constant 0 : index
    %15 = vector.load %arg5[%c0_12, %c0_13] : memref<1x360xf32, #tpu.memory_space<vmem>>, vector<1x360xf32>
    %16 = vector.broadcast %15 : vector<1x360xf32> to vector<8x360xf32>
    %17 = arith.addf %14, %16 : vector<8x360xf32>
    %c0_14 = arith.constant 0 : index
    %c0_15 = arith.constant 0 : index
    %18 = vector.load %arg6[%c0_14, %c0_15] : memref<24x384xbf16, #tpu.memory_space<vmem>>, vector<24x384xbf16>
    %c0_16 = arith.constant 0 : index
    %c0_17 = arith.constant 0 : index
    %19 = vector.load %arg7[%c0_16, %c0_17] : memref<2x24xf32, #tpu.memory_space<vmem>>, vector<1x24xf32>
    %c1 = arith.constant 1 : index
    %c0_18 = arith.constant 0 : index
    %20 = vector.load %arg7[%c1, %c0_18] : memref<2x24xf32, #tpu.memory_space<vmem>>, vector<1x24xf32>
    %cst_19 = arith.constant 0.000000e+00 : f32
    %21 = vector.broadcast %cst_19 : f32 to vector<8x24xf32>
    %22 = vector.extract_strided_slice %17 {offsets = [0, 0], sizes = [8, 24], strides = [1, 1]} : vector<8x360xf32> to vector<8x24xf32>
    %23 = vector.extract_strided_slice %17 {offsets = [0, 24], sizes = [8, 24], strides = [1, 1]} : vector<8x360xf32> to vector<8x24xf32>
    %24 = vector.extract_strided_slice %17 {offsets = [0, 48], sizes = [8, 24], strides = [1, 1]} : vector<8x360xf32> to vector<8x24xf32>
    %25 = arith.truncf %21 : vector<8x24xf32> to vector<8x24xbf16>
    %cst_20 = arith.constant dense<0.000000e+00> : vector<8x384xf32>
    %26 = tpu.matmul %25, %18, %cst_20 {dimension_numbers = #tpu.dot_dimension_numbers<[1], [0], [0], [1], [0, 0, 1, 1], [], []>} : vector<8x24xbf16>, vector<24x384xbf16>, vector<8x384xf32> -> vector<8x384xf32>
    %27 = vector.extract_strided_slice %26 {offsets = [0, 0], sizes = [8, 24], strides = [1, 1]} : vector<8x384xf32> to vector<8x24xf32>
    %28 = arith.addf %22, %27 : vector<8x24xf32>
    %29 = arith.negf %28 : vector<8x24xf32>
    %30 = math.exp %29 : vector<8x24xf32>
    %cst_21 = arith.constant 1.000000e+00 : f32
    %31 = vector.broadcast %cst_21 : f32 to vector<8x24xf32>
    %32 = arith.addf %31, %30 : vector<8x24xf32>
    %33 = arith.divf %31, %32 : vector<8x24xf32>
    %34 = vector.extract_strided_slice %26 {offsets = [0, 128], sizes = [8, 24], strides = [1, 1]} : vector<8x384xf32> to vector<8x24xf32>
    %35 = arith.addf %23, %34 : vector<8x24xf32>
    %36 = arith.negf %35 : vector<8x24xf32>
    %37 = math.exp %36 : vector<8x24xf32>
    %cst_22 = arith.constant 1.000000e+00 : f32
    %38 = vector.broadcast %cst_22 : f32 to vector<8x24xf32>
    %39 = arith.addf %38, %37 : vector<8x24xf32>
    %40 = arith.divf %38, %39 : vector<8x24xf32>
    %41 = vector.extract_strided_slice %26 {offsets = [0, 256], sizes = [8, 24], strides = [1, 1]} : vector<8x384xf32> to vector<8x24xf32>
    %42 = vector.broadcast %20 : vector<1x24xf32> to vector<8x24xf32>
    %43 = arith.addf %41, %42 : vector<8x24xf32>
    %44 = arith.mulf %33, %43 : vector<8x24xf32>
    %45 = arith.addf %24, %44 : vector<8x24xf32>
    %46 = math.tanh %45 : vector<8x24xf32>
    %cst_23 = arith.constant 1.000000e+00 : f32
    %47 = vector.broadcast %cst_23 : f32 to vector<8x24xf32>
    %48 = arith.subf %47, %40 : vector<8x24xf32>
    %49 = arith.mulf %48, %46 : vector<8x24xf32>
    %50 = arith.mulf %40, %21 : vector<8x24xf32>
    %51 = arith.addf %49, %50 : vector<8x24xf32>
    %52 = vector.extract_strided_slice %17 {offsets = [0, 72], sizes = [8, 24], strides = [1, 1]} : vector<8x360xf32> to vector<8x24xf32>
    %53 = vector.extract_strided_slice %17 {offsets = [0, 96], sizes = [8, 24], strides = [1, 1]} : vector<8x360xf32> to vector<8x24xf32>
    %54 = vector.extract_strided_slice %17 {offsets = [0, 120], sizes = [8, 24], strides = [1, 1]} : vector<8x360xf32> to vector<8x24xf32>
    %55 = arith.truncf %51 : vector<8x24xf32> to vector<8x24xbf16>
    %cst_24 = arith.constant dense<0.000000e+00> : vector<8x384xf32>
    %56 = tpu.matmul %55, %18, %cst_24 {dimension_numbers = #tpu.dot_dimension_numbers<[1], [0], [0], [1], [0, 0, 1, 1], [], []>} : vector<8x24xbf16>, vector<24x384xbf16>, vector<8x384xf32> -> vector<8x384xf32>
    %57 = vector.extract_strided_slice %56 {offsets = [0, 0], sizes = [8, 24], strides = [1, 1]} : vector<8x384xf32> to vector<8x24xf32>
    %58 = arith.addf %52, %57 : vector<8x24xf32>
    %59 = arith.negf %58 : vector<8x24xf32>
    %60 = math.exp %59 : vector<8x24xf32>
    %cst_25 = arith.constant 1.000000e+00 : f32
    %61 = vector.broadcast %cst_25 : f32 to vector<8x24xf32>
    %62 = arith.addf %61, %60 : vector<8x24xf32>
    %63 = arith.divf %61, %62 : vector<8x24xf32>
    %64 = vector.extract_strided_slice %56 {offsets = [0, 128], sizes = [8, 24], strides = [1, 1]} : vector<8x384xf32> to vector<8x24xf32>
    %65 = arith.addf %53, %64 : vector<8x24xf32>
    %66 = arith.negf %65 : vector<8x24xf32>
    %67 = math.exp %66 : vector<8x24xf32>
    %cst_26 = arith.constant 1.000000e+00 : f32
    %68 = vector.broadcast %cst_26 : f32 to vector<8x24xf32>
    %69 = arith.addf %68, %67 : vector<8x24xf32>
    %70 = arith.divf %68, %69 : vector<8x24xf32>
    %71 = vector.extract_strided_slice %56 {offsets = [0, 256], sizes = [8, 24], strides = [1, 1]} : vector<8x384xf32> to vector<8x24xf32>
    %72 = vector.broadcast %20 : vector<1x24xf32> to vector<8x24xf32>
    %73 = arith.addf %71, %72 : vector<8x24xf32>
    %74 = arith.mulf %63, %73 : vector<8x24xf32>
    %75 = arith.addf %54, %74 : vector<8x24xf32>
    %76 = math.tanh %75 : vector<8x24xf32>
    %cst_27 = arith.constant 1.000000e+00 : f32
    %77 = vector.broadcast %cst_27 : f32 to vector<8x24xf32>
    %78 = arith.subf %77, %70 : vector<8x24xf32>
    %79 = arith.mulf %78, %76 : vector<8x24xf32>
    %80 = arith.mulf %70, %51 : vector<8x24xf32>
    %81 = arith.addf %79, %80 : vector<8x24xf32>
    %82 = vector.extract_strided_slice %17 {offsets = [0, 144], sizes = [8, 24], strides = [1, 1]} : vector<8x360xf32> to vector<8x24xf32>
    %83 = vector.extract_strided_slice %17 {offsets = [0, 168], sizes = [8, 24], strides = [1, 1]} : vector<8x360xf32> to vector<8x24xf32>
    %84 = vector.extract_strided_slice %17 {offsets = [0, 192], sizes = [8, 24], strides = [1, 1]} : vector<8x360xf32> to vector<8x24xf32>
    %85 = arith.truncf %81 : vector<8x24xf32> to vector<8x24xbf16>
    %cst_28 = arith.constant dense<0.000000e+00> : vector<8x384xf32>
    %86 = tpu.matmul %85, %18, %cst_28 {dimension_numbers = #tpu.dot_dimension_numbers<[1], [0], [0], [1], [0, 0, 1, 1], [], []>} : vector<8x24xbf16>, vector<24x384xbf16>, vector<8x384xf32> -> vector<8x384xf32>
    %87 = vector.extract_strided_slice %86 {offsets = [0, 0], sizes = [8, 24], strides = [1, 1]} : vector<8x384xf32> to vector<8x24xf32>
    %88 = arith.addf %82, %87 : vector<8x24xf32>
    %89 = arith.negf %88 : vector<8x24xf32>
    %90 = math.exp %89 : vector<8x24xf32>
    %cst_29 = arith.constant 1.000000e+00 : f32
    %91 = vector.broadcast %cst_29 : f32 to vector<8x24xf32>
    %92 = arith.addf %91, %90 : vector<8x24xf32>
    %93 = arith.divf %91, %92 : vector<8x24xf32>
    %94 = vector.extract_strided_slice %86 {offsets = [0, 128], sizes = [8, 24], strides = [1, 1]} : vector<8x384xf32> to vector<8x24xf32>
    %95 = arith.addf %83, %94 : vector<8x24xf32>
    %96 = arith.negf %95 : vector<8x24xf32>
    %97 = math.exp %96 : vector<8x24xf32>
    %cst_30 = arith.constant 1.000000e+00 : f32
    %98 = vector.broadcast %cst_30 : f32 to vector<8x24xf32>
    %99 = arith.addf %98, %97 : vector<8x24xf32>
    %100 = arith.divf %98, %99 : vector<8x24xf32>
    %101 = vector.extract_strided_slice %86 {offsets = [0, 256], sizes = [8, 24], strides = [1, 1]} : vector<8x384xf32> to vector<8x24xf32>
    %102 = vector.broadcast %20 : vector<1x24xf32> to vector<8x24xf32>
    %103 = arith.addf %101, %102 : vector<8x24xf32>
    %104 = arith.mulf %93, %103 : vector<8x24xf32>
    %105 = arith.addf %84, %104 : vector<8x24xf32>
    %106 = math.tanh %105 : vector<8x24xf32>
    %cst_31 = arith.constant 1.000000e+00 : f32
    %107 = vector.broadcast %cst_31 : f32 to vector<8x24xf32>
    %108 = arith.subf %107, %100 : vector<8x24xf32>
    %109 = arith.mulf %108, %106 : vector<8x24xf32>
    %110 = arith.mulf %100, %81 : vector<8x24xf32>
    %111 = arith.addf %109, %110 : vector<8x24xf32>
    %112 = vector.extract_strided_slice %17 {offsets = [0, 216], sizes = [8, 24], strides = [1, 1]} : vector<8x360xf32> to vector<8x24xf32>
    %113 = vector.extract_strided_slice %17 {offsets = [0, 240], sizes = [8, 24], strides = [1, 1]} : vector<8x360xf32> to vector<8x24xf32>
    %114 = vector.extract_strided_slice %17 {offsets = [0, 264], sizes = [8, 24], strides = [1, 1]} : vector<8x360xf32> to vector<8x24xf32>
    %115 = arith.truncf %111 : vector<8x24xf32> to vector<8x24xbf16>
    %cst_32 = arith.constant dense<0.000000e+00> : vector<8x384xf32>
    %116 = tpu.matmul %115, %18, %cst_32 {dimension_numbers = #tpu.dot_dimension_numbers<[1], [0], [0], [1], [0, 0, 1, 1], [], []>} : vector<8x24xbf16>, vector<24x384xbf16>, vector<8x384xf32> -> vector<8x384xf32>
    %117 = vector.extract_strided_slice %116 {offsets = [0, 0], sizes = [8, 24], strides = [1, 1]} : vector<8x384xf32> to vector<8x24xf32>
    %118 = arith.addf %112, %117 : vector<8x24xf32>
    %119 = arith.negf %118 : vector<8x24xf32>
    %120 = math.exp %119 : vector<8x24xf32>
    %cst_33 = arith.constant 1.000000e+00 : f32
    %121 = vector.broadcast %cst_33 : f32 to vector<8x24xf32>
    %122 = arith.addf %121, %120 : vector<8x24xf32>
    %123 = arith.divf %121, %122 : vector<8x24xf32>
    %124 = vector.extract_strided_slice %116 {offsets = [0, 128], sizes = [8, 24], strides = [1, 1]} : vector<8x384xf32> to vector<8x24xf32>
    %125 = arith.addf %113, %124 : vector<8x24xf32>
    %126 = arith.negf %125 : vector<8x24xf32>
    %127 = math.exp %126 : vector<8x24xf32>
    %cst_34 = arith.constant 1.000000e+00 : f32
    %128 = vector.broadcast %cst_34 : f32 to vector<8x24xf32>
    %129 = arith.addf %128, %127 : vector<8x24xf32>
    %130 = arith.divf %128, %129 : vector<8x24xf32>
    %131 = vector.extract_strided_slice %116 {offsets = [0, 256], sizes = [8, 24], strides = [1, 1]} : vector<8x384xf32> to vector<8x24xf32>
    %132 = vector.broadcast %19 : vector<1x24xf32> to vector<8x24xf32>
    %133 = arith.addf %131, %132 : vector<8x24xf32>
    %134 = arith.mulf %123, %133 : vector<8x24xf32>
    %135 = arith.addf %114, %134 : vector<8x24xf32>
    %136 = math.tanh %135 : vector<8x24xf32>
    %cst_35 = arith.constant 1.000000e+00 : f32
    %137 = vector.broadcast %cst_35 : f32 to vector<8x24xf32>
    %138 = arith.subf %137, %130 : vector<8x24xf32>
    %139 = arith.mulf %138, %136 : vector<8x24xf32>
    %140 = arith.mulf %130, %111 : vector<8x24xf32>
    %141 = arith.addf %139, %140 : vector<8x24xf32>
    %142 = vector.extract_strided_slice %17 {offsets = [0, 288], sizes = [8, 24], strides = [1, 1]} : vector<8x360xf32> to vector<8x24xf32>
    %143 = vector.extract_strided_slice %17 {offsets = [0, 312], sizes = [8, 24], strides = [1, 1]} : vector<8x360xf32> to vector<8x24xf32>
    %144 = vector.extract_strided_slice %17 {offsets = [0, 336], sizes = [8, 24], strides = [1, 1]} : vector<8x360xf32> to vector<8x24xf32>
    %145 = arith.truncf %141 : vector<8x24xf32> to vector<8x24xbf16>
    %cst_36 = arith.constant dense<0.000000e+00> : vector<8x384xf32>
    %146 = tpu.matmul %145, %18, %cst_36 {dimension_numbers = #tpu.dot_dimension_numbers<[1], [0], [0], [1], [0, 0, 1, 1], [], []>} : vector<8x24xbf16>, vector<24x384xbf16>, vector<8x384xf32> -> vector<8x384xf32>
    %147 = vector.extract_strided_slice %146 {offsets = [0, 0], sizes = [8, 24], strides = [1, 1]} : vector<8x384xf32> to vector<8x24xf32>
    %148 = arith.addf %142, %147 : vector<8x24xf32>
    %149 = arith.negf %148 : vector<8x24xf32>
    %150 = math.exp %149 : vector<8x24xf32>
    %cst_37 = arith.constant 1.000000e+00 : f32
    %151 = vector.broadcast %cst_37 : f32 to vector<8x24xf32>
    %152 = arith.addf %151, %150 : vector<8x24xf32>
    %153 = arith.divf %151, %152 : vector<8x24xf32>
    %154 = vector.extract_strided_slice %146 {offsets = [0, 128], sizes = [8, 24], strides = [1, 1]} : vector<8x384xf32> to vector<8x24xf32>
    %155 = arith.addf %143, %154 : vector<8x24xf32>
    %156 = arith.negf %155 : vector<8x24xf32>
    %157 = math.exp %156 : vector<8x24xf32>
    %cst_38 = arith.constant 1.000000e+00 : f32
    %158 = vector.broadcast %cst_38 : f32 to vector<8x24xf32>
    %159 = arith.addf %158, %157 : vector<8x24xf32>
    %160 = arith.divf %158, %159 : vector<8x24xf32>
    %161 = vector.extract_strided_slice %146 {offsets = [0, 256], sizes = [8, 24], strides = [1, 1]} : vector<8x384xf32> to vector<8x24xf32>
    %162 = vector.broadcast %19 : vector<1x24xf32> to vector<8x24xf32>
    %163 = arith.addf %161, %162 : vector<8x24xf32>
    %164 = arith.mulf %153, %163 : vector<8x24xf32>
    %165 = arith.addf %144, %164 : vector<8x24xf32>
    %166 = math.tanh %165 : vector<8x24xf32>
    %cst_39 = arith.constant 1.000000e+00 : f32
    %167 = vector.broadcast %cst_39 : f32 to vector<8x24xf32>
    %168 = arith.subf %167, %160 : vector<8x24xf32>
    %169 = arith.mulf %168, %166 : vector<8x24xf32>
    %170 = arith.mulf %160, %141 : vector<8x24xf32>
    %171 = arith.addf %169, %170 : vector<8x24xf32>
    %172 = arith.truncf %171 : vector<8x24xf32> to vector<8x24xbf16>
    %c0_40 = arith.constant 0 : index
    %c0_41 = arith.constant 0 : index
    %173 = vector.load %arg8[%c0_40, %c0_41] : memref<24x16xbf16, #tpu.memory_space<vmem>>, vector<24x16xbf16>
    %cst_42 = arith.constant dense<0.000000e+00> : vector<8x16xf32>
    %174 = tpu.matmul %172, %173, %cst_42 {dimension_numbers = #tpu.dot_dimension_numbers<[1], [0], [0], [1], [0, 0, 1, 1], [], []>} : vector<8x24xbf16>, vector<24x16xbf16>, vector<8x16xf32> -> vector<8x16xf32>
    %c0_43 = arith.constant 0 : index
    %c0_44 = arith.constant 0 : index
    %175 = vector.load %arg9[%c0_43, %c0_44] : memref<128x16xbf16, #tpu.memory_space<vmem>>, vector<128x16xbf16>
    %cst_45 = arith.constant dense<0.000000e+00> : vector<8x16xf32>
    %176 = tpu.matmul %1, %175, %cst_45 {dimension_numbers = #tpu.dot_dimension_numbers<[1], [0], [0], [1], [0, 0, 1, 1], [], []>} : vector<8x128xbf16>, vector<128x16xbf16>, vector<8x16xf32> -> vector<8x16xf32>
    %177 = arith.addf %174, %176 : vector<8x16xf32>
    %c0_46 = arith.constant 0 : index
    %c0_47 = arith.constant 0 : index
    %178 = vector.load %arg10[%c0_46, %c0_47] : memref<1x16xf32, #tpu.memory_space<vmem>>, vector<1x16xf32>
    %179 = vector.broadcast %178 : vector<1x16xf32> to vector<8x16xf32>
    %180 = arith.addf %177, %179 : vector<8x16xf32>
    %181 = arith.negf %180 : vector<8x16xf32>
    %182 = math.exp %181 : vector<8x16xf32>
    %cst_48 = arith.constant 1.000000e+00 : f32
    %183 = vector.broadcast %cst_48 : f32 to vector<8x16xf32>
    %184 = arith.addf %183, %182 : vector<8x16xf32>
    %185 = arith.divf %183, %184 : vector<8x16xf32>
    %c0_49 = arith.constant 0 : index
    %c0_50 = arith.constant 0 : index
    %186 = vector.load %arg11[%c0_49, %c0_50] : memref<8x16xf32, #tpu.memory_space<vmem>>, vector<8x16xf32>
    tpu.vector_store %arg11[%c0_49, %c0_50], %185 {strides = array<i32>} : memref<8x16xf32, #tpu.memory_space<vmem>>, vector<8x16xf32>,
    return
  }
}

</mosaic_0001>

<bundles_post_ra>
// kernel: forward.1
= control target key start
LH: loop header
LB: loop body
LE: loop exit
PB: predicated region body
PF: predicated region fallthrough
CT: control target
= control target key end

     0   :  { %vm390_vm0 = vcmask 1043456   ;;  %vm386_vm1 = vcmask 326656   ;;  %s1596_s20 = smov 24   ;;  %s1597_s21 = smov 104   ;;  %vm471_vm10 = vcmask 195584   ;;  %s2070_s1 = inlined_call_operand.vmem [shape: bf16[128,256], index: 1, kind: input, shape index: {}]   ;;  %s2071_s3 = inlined_call_operand.vmem [shape: bf16[256,40], index: 3, kind: input, shape index: {}]   ;;  %s2072_s0 = inlined_call_operand.vmem [shape: f32[8,128], index: 0, kind: input, shape index: {}]   ;;  %s2073_s6 = inlined_call_operand.vmem [shape: bf16[24,384], index: 6, kind: input, shape index: {}]   ;;  %s2074_s4 = inlined_call_operand.vmem [shape: bf16[40,360], index: 4, kind: input, shape index: {}]   ;;  %s2075_s2 = inlined_call_operand.vmem [shape: f32[1,256], index: 2, kind: input, shape index: {}]   ;;  %s2076_s7 = inlined_call_operand.vmem [shape: f32[2,24], index: 7, kind: input, shape index: {}]   ;;  %s2077_s5 = inlined_call_operand.vmem [shape: f32[1,360], index: 5, kind: input, shape index: {}]   ;;  %s2078_s9 = inlined_call_operand.vmem [shape: bf16[128,16], index: 9, kind: input, shape index: {}]   ;;  %s2079_s8 = inlined_call_operand.vmem [shape: bf16[24,16], index: 8, kind: input, shape index: {}]   ;;  %s2080_s10 = inlined_call_operand.vmem [shape: f32[1,16], index: 10, kind: input, shape index: {}]   ;;  %s2081_s11 = inlined_call_operand.vmem [shape: f32[8,16], index: 11, kind: output, shape index: {}]  }
   0x1   :  { %v1299_v0 = vld [vmem:[%s2070_s1 + $0x70] sm:$0xf]  ;;  %v1484_v1 = vld [vmem:[%s2070_s1 + $0x74] sm:$0xf0]  ;;  %v1483_v2 = vld [vmem:[%s2070_s1 + $0x74] sm:$0xf] }
   0x2   :  { %v1300_v3 = vor.u32 %v1484_v1, %v1299_v0  ;;  %v1301_v4 = vld [vmem:[%s2070_s1 + $0x78] sm:$0xf0]  ;;  %v1291_v5 = vld [vmem:[%s2070_s1 + $0x60] sm:$0xf]  ;;  %v1482_v6 = vld [vmem:[%s2070_s1 + $0x64] sm:$0xf0] }
   0x3   :  { %v1304_v7 = vor.u32 %v1483_v2, %v1301_v4  ;;  %v1481_v8 = vld [vmem:[%s2070_s1 + $0x64] sm:$0xf]  ;;  %v1293_v9 = vld [vmem:[%s2070_s1 + $0x68] sm:$0xf0]  ;;  %v1292_v10 = vor.u32 %v1482_v6, %v1291_v5  ;;  %v1283_v12 = vld [vmem:[%s2070_s1 + $0x50] sm:$0xf] }
   0x4   :  { %143 = vmatpush.bf16.msra.mxu0 %v1300_v3  ;;  %v1296_v11 = vor.u32 %v1481_v8, %v1293_v9  ;;  %v1480_v13 = vld [vmem:[%s2070_s1 + $0x54] sm:$0xf0]  ;;  %v1479_v14 = vld [vmem:[%s2070_s1 + $0x54] sm:$0xf]  ;;  %v1285_v15 = vld [vmem:[%s2070_s1 + $0x58] sm:$0xf0] }
   0x5   :  { %156 = vmatpush.bf16.msra.mxu1 %v1304_v7  ;;  %v1284_v16 = vor.u32 %v1480_v13, %v1283_v12  ;;  %v1288_v17 = vor.u32 %v1479_v14, %v1285_v15  ;;  %v1275_v18 = vld [vmem:[%s2070_s1 + $0x40] sm:$0xf]  ;;  %v1478_v19 = vld [vmem:[%s2070_s1 + $0x44] sm:$0xf0]  ;;  %v1477_v20 = vld [vmem:[%s2070_s1 + $0x44] sm:$0xf] }
   0x6   :  { %v1277_v21 = vld [vmem:[%s2070_s1 + $0x48] sm:$0xf0]  ;;  %v1276_v22 = vor.u32 %v1478_v19, %v1275_v18  ;;  %v1492_v23 = vld [vmem:[%s2071_s3 + $0x38] sm:$0xff]  ;;  %v1267_v26 = vld [vmem:[%s2070_s1 + $0x30] sm:$0xf]  ;;  %s1598_s22 = smov 96  }
   0x7   :  { %v1500_v24 = vld [vmem:[%s2071_s3 + $0x78] sm:$0xff]  ;;  %v1280_v25 = vor.u32 %v1477_v20, %v1277_v21  ;;  %v1475_v28 = vld [vmem:[%s2070_s1 + $0x34] sm:$0xf]  ;;  %301 = vmatpush.bf16.msra.mxu2 %v1492_v23  ;;  %v1259_v34 = vld [vmem:[%s2070_s1 + $0x20] sm:$0xf]  ;;  %s1599_s23 = smov 72  }
   0x8   :  { %144 = vmatpush.bf16.msra.mxu0 %v1292_v10  ;;  %v1476_v27 = vld [vmem:[%s2070_s1 + $0x34] sm:$0xf0]  ;;  %v1269_v29 = vld [vmem:[%s2070_s1 + $0x38] sm:$0xf0]  ;;  %314 = vmatpush.bf16.msra.mxu3 %v1500_v24  ;;  %v1491_v30 = vld [vmem:[%s2071_s3 + $0x30] sm:$0xff]  ;;  %s1601_s24 = smov 16  }
   0x9   :  { %157 = vmatpush.bf16.msra.mxu1 %v1296_v11  ;;  %v1499_v31 = vld [vmem:[%s2071_s3 + $0x70] sm:$0xff]  ;;  %v1268_v32 = vor.u32 %v1476_v27, %v1267_v26  ;;  %v1272_v33 = vor.u32 %v1475_v28, %v1269_v29  ;;  %v1474_v35 = vld [vmem:[%s2070_s1 + $0x24] sm:$0xf0]  ;;  %v1473_v36 = vld [vmem:[%s2070_s1 + $0x24] sm:$0xf]  ;;  %s1602_s25 = smov 40  }
   0xa   :  { %v1261_v37 = vld [vmem:[%s2070_s1 + $0x28] sm:$0xf0]  ;;  %v1260_v40 = vor.u32 %v1474_v35, %v1259_v34  ;;  %v1251_v42 = vld [vmem:[%s2070_s1 + $0x10] sm:$0xf]  ;;  %v1472_v43 = vld [vmem:[%s2070_s1 + $0x14] sm:$0xf0] }
   0xb   :  { %302 = vmatpush.bf16.msra.mxu2 %v1491_v30  ;;  %v1490_v38 = vld [vmem:[%s2071_s3 + $0x28] sm:$0xff]  ;;  %v1264_v41 = vor.u32 %v1473_v36, %v1261_v37  ;;  %v1471_v44 = vld [vmem:[%s2070_s1 + $0x14] sm:$0xf]  ;;  %v1253_v45 = vld [vmem:[%s2070_s1 + $0x18] sm:$0xf0]  ;;  %v1252_v48 = vor.u32 %v1472_v43, %v1251_v42  ;;  %v1594_v42 = vmov 0  }
   0xc   :  { %145 = vmatpush.bf16.msra.mxu0 %v1284_v16  ;;  %315 = vmatpush.bf16.msra.mxu3 %v1499_v31  ;;  %v1498_v39 = vld [vmem:[%s2071_s3 + $0x68] sm:$0xff]  ;;  %v1489_v46 = vld [vmem:[%s2071_s3 + $0x20] sm:$0xff]  ;;  %v1256_v49 = vor.u32 %v1471_v44, %v1253_v45  ;;  %v1488_v54 = vld [vmem:[%s2071_s3 + $0x18] sm:$0xff]  ;;  %s1603_s26 = smov 88   ;;  %s1604_s28 = smov 112  }
   0xd   :  { %158 = vmatpush.bf16.msra.mxu1 %v1288_v17  ;;  %v1497_v47 = vld [vmem:[%s2071_s3 + $0x60] sm:$0xff]  ;;  %v1470_v51 = vld [vmem:[%s2070_s1 + $0x4] sm:$0xf0]  ;;  %v1245_v53 = vld [vmem:[%s2070_s1 + $0x8] sm:$0xf0] }
   0xe   :  { %v1243_v50 = vld [vmem:[%s2070_s1] sm:$0xf]  ;;  %v1469_v52 = vld [vmem:[%s2070_s1 + $0x4] sm:$0xf]  ;;  %v1496_v55 = vld [vmem:[%s2071_s3 + $0x58] sm:$0xff] }
   0xf   :  { %303 = vmatpush.bf16.msra.mxu2 %v1490_v38  ;;  %v1244_v56 = vor.u32 %v1470_v51, %v1243_v50  ;;  %v39_v57 = vld [vmem:[%s2072_s0] sm:$0xff]  ;;  %v1248_v58 = vor.u32 %v1469_v52, %v1245_v53  ;;  %v1487_v59 = vld [vmem:[%s2071_s3 + $0x10] sm:$0xff]  ;;  %v1486_v62 = vld [vmem:[%s2071_s3 + $0x8] sm:$0xff] }
  0x10   :  { %146 = vmatpush.bf16.msra.mxu0 %v1276_v22  ;;  %316 = vmatpush.bf16.msra.mxu3 %v1498_v39  ;;  %v1495_v60 = vld [vmem:[%s2071_s3 + $0x50] sm:$0xff]  ;;  %v1801_v61 = vpack.c.bf16 %v39_v57, %v39_v57  ;;  %v1494_v63 = vld [vmem:[%s2071_s3 + $0x48] sm:$0xff]  ;;  %v1485_v0 = vld [vmem:[%s2071_s3] sm:$0xff] }
  0x11   :  { %159 = vmatpush.bf16.msra.mxu1 %v1280_v25  ;;  %v1493_v1 = vld [vmem:[%s2071_s3 + $0x40] sm:$0xff]  ;;  %v1820_v2 = vld [vmem:[%s2073_s6 + $0x18] sm:$0xff]  ;;  %v336_v3 = vld [vmem:[%s2074_s4 + $0x30] sm:$0xff]  ;;  %s1600_s3 = smov 32  }
  0x12   :  { %v459_v4 = vunpack.c.l.b16 %v1820_v2  ;;  %v368_v5 = vunpack.c.l.b16 %v336_v3  ;;  %v1398_v8 = vld [vmem:[%s2073_s6] sm:$0xf]  ;;  %v1508_v9 = vld [vmem:[%s2073_s6 + $0x8] sm:$0xf0]  ;;  %v369_v13 = vunpack.c.h.b16 %v336_v3  ;;  %v337_v14 = vld [vmem:[%s2074_s4 + $0x38] sm:$0xf] }
  0x13   :  { %304 = vmatpush.bf16.msra.mxu2 %v1489_v46  ;;  %v1837_v12 = vor.u32 %v1508_v9, %v1398_v8  ;;  %v1383_v15 = vld [vmem:[%s2074_s4 + $0x18] sm:$0xf]  ;;  %v1505_v16 = vld [vmem:[%s2074_s4 + $0x20] sm:$0xf0]  ;;  %v370_v17 = vunpack.c.l.b16 %v337_v14  ;;  %v57_v19 = vld [vmem:[%s2075_s2] sm:$0x3] }
  0x14   :  { %147 = vmatpush.bf16.msra.mxu0 %v1268_v32  ;;  %317 = vmatpush.bf16.msra.mxu3 %v1497_v47  ;;  %v465_v6 = vpack.c.b16 %v459_v4, %v459_v4  ;;  %v377_v7 = vpack.c.b16 %v368_v5, %v368_v5  ;;  %v1384_v18 = vor.u32 %v1505_v16, %v1383_v15  ;;  %v1504_v21 = vld [vmem:[%s2074_s4 + $0x1c] sm:$0xf]  ;;  %v1385_v22 = vld [vmem:[%s2074_s4 + $0x24] sm:$0xf0]  ;;  %v1391_v24 = vld [vmem:[%s2074_s4 + $0x20] sm:$0xf] }
  0x15   :  { %160 = vmatpush.bf16.msra.mxu1 %v1272_v33  ;;  %v378_v20 = vpack.c.b16 %v369_v13, %v369_v13  ;;  %v379_v23 = vpack.c.b16 %v370_v17, %v370_v17  ;;  %v1506_v25 = vld [vmem:[%s2074_s4 + $0x28] sm:$0xf0]  ;;  %v59_v27 = vperm.slane %v57_v19, 0  ;;  %v1388_v29 = vor.u32 %v1504_v21, %v1385_v22  ;;  %v1371_v43 = vld [vmem:[%s2074_s4] sm:$0xf]  ;;  %s1595_s2 = smov 48  }
  0x16   :  { %v1833_v10 = vsel %vm390_vm0, %v465_v6, 0  ;;  %v392_v11 = vsel %vm390_vm0, %v377_v7, 0  ;;  %v60_v30 = vperm.slane %v57_v19, 1  ;;  %v1392_v31 = vor.u32 %v1506_v25, %v1391_v24  ;;  %v1502_v44 = vld [vmem:[%s2074_s4 + $0x8] sm:$0xf0] }
  0x17   :  { %305 = vmatpush.bf16.msra.mxu2 %v1488_v54  ;;  %v395_v26 = vsel %vm390_vm0, %v378_v20, 0  ;;  %v398_v28 = vsel %vm390_vm0, %v379_v23, 0  ;;  %v1501_v45 = vld [vmem:[%s2074_s4 + $0x4] sm:$0xf]  ;;  %v1372_v46 = vor.u32 %v1502_v44, %v1371_v43  ;;  %v1373_v47 = vld [vmem:[%s2074_s4 + $0xc] sm:$0xf0] }
  0x18   :  { %148 = vmatpush.bf16.msra.mxu0 %v1260_v40  ;;  %318 = vmatpush.bf16.msra.mxu3 %v1496_v55  ;;  %v1376_v50 = vor.u32 %v1501_v45, %v1373_v47  ;;  %v444_v52 = vld [vmem:[%s2073_s6 + $0x20] sm:$0xf]  ;;  %v1406_v55 = vld [vmem:[%s2073_s6 + $0x8] sm:$0xf] }
  0x19   :  { %161 = vmatpush.bf16.msra.mxu1 %v1264_v41  ;;  %v461_v53 = vunpack.c.l.b16 %v444_v52 }
  0x1b   :  { %306 = vmatpush.bf16.msra.mxu2 %v1487_v59  ;;  %v467_v54 = vpack.c.b16 %v461_v53, %v461_v53  ;;  %v460_v59 = vunpack.c.h.b16 %v1820_v2 }
  0x1c   :  { %149 = vmatpush.bf16.msra.mxu0 %v1252_v48  ;;  %319 = vmatpush.bf16.msra.mxu3 %v1495_v60  ;;  %v1379_v48 = vld [vmem:[%s2074_s4 + $0x8] sm:$0xf] }
  0x1d   :  { %162 = vmatpush.bf16.msra.mxu1 %v1256_v49  ;;  %v1503_v49 = vld [vmem:[%s2074_s4 + $0x10] sm:$0xf0]  ;;  %v1896_v57 = vsel %vm390_vm0, %v467_v54, 0  ;;  %v466_v60 = vpack.c.b16 %v460_v59, %v460_v59 }
  0x1e   :  { %v1380_v51 = vor.u32 %v1503_v49, %v1379_v48 }
  0x1f   :  { %307 = vmatpush.bf16.msra.mxu2 %v1486_v62  ;;  %v1507_v62 = vld [vmem:[%s2073_s6 + $0x4] sm:$0xf] }
  0x20   :  { %150 = vmatpush.bf16.msra.mxu0 %v1244_v56  ;;  %320 = vmatpush.bf16.msra.mxu3 %v1494_v63  ;;  %v1509_v56 = vld [vmem:[%s2073_s6 + $0x10] sm:$0xf0]  ;;  %v1400_v63 = vld [vmem:[%s2073_s6 + $0xc] sm:$0xf0] }
  0x21   :  { %163 = vmatpush.bf16.msra.mxu1 %v1248_v58  ;;  %v1899_v58 = vor.u32 %v1509_v56, %v1406_v55 }
  0x23   :  { %151 = vmatmul.bf16.vlgmr.msra.gmra.mxu0 %v1801_v61  ;;  %308 = vmatpush.bf16.msra.mxu2 %v1485_v0  ;;  %v1910_v0 = vsel %vm390_vm0, %v466_v60, 0 }
  0x24   :  { %164 = vmatmul.bf16.vlgmr.msra.gmra.mxu1 %v1801_v61  ;;  %321 = vmatpush.bf16.msra.mxu3 %v1493_v1  ;;  %v1913_v1 = vor.u32 %v1507_v62, %v1400_v63 }
  0x25   :  { %405 = vmatpush.bf16.msrb.mxu0 %v392_v11  ;;  %418 = vmatpush.bf16.msrb.mxu1 %v395_v26  ;;  %v1933_v11 = vld [vmem:[%s2077_s5] sm:$0x7] }
  0x26   :  { %v340_v13 = vperm.slane %v1933_v11, 0 }
  0x27   :  { %431 = vmatpush.bf16.msrb.mxu2 %v398_v28 }
  0x28   :  { %490 = vmatpush.bf16.msrb.mxu3 %v1833_v10 }
  0x29   :  { %406 = vmatpush.bf16.msrb.mxu0 %v1384_v18  ;;  %419 = vmatpush.bf16.msrb.mxu1 %v1388_v29 }
  0x2b   :  { %432 = vmatpush.bf16.msrb.mxu2 %v1392_v31  ;;  %v1946_v31 = vld [vmem:[%s2076_s7 + $0x1] ss:$0 sm:$0xff] }
  0x2c   :  { %491 = vmatpush.bf16.msrb.mxu3 %v1837_v12 }
  0x2d   :  { %407 = vmatpush.bf16.msrb.mxu0 %v1372_v46  ;;  %420 = vmatpush.bf16.msrb.mxu1 %v1376_v50 }
  0x2f   :  { %433 = vmatpush.bf16.msrb.mxu2 %v1380_v51 }
  0x31   :  { %516 = vmatpush.bf16.msra.mxu1 %v1896_v57  ;;  %503 = vmatpush.bf16.msra.mxu0 %v1910_v0 }
  0x35   :  { %517 = vmatpush.bf16.msra.mxu1 %v1899_v58  ;;  %504 = vmatpush.bf16.msra.mxu0 %v1913_v1 }
  0xa0   :  { %v152_v32 = vpop.f32.mrf.mxu0 }
  0xa1   :  { %v153_v33 = vadd.f32 %v152_v32, %v59_v27  ;;  %v165_v34 = vpop.f32.mrf.mxu1 }
  0xa2   :  { %v166_v35 = vadd.f32 %v165_v34, %v60_v30 }
  0xa3   :  { %v169_v36 = vmax.f32 %v153_v33, 0.0 }
  0xa4   :  { %v170_v37 = vmax.f32 %v166_v35, 0.0 }
  0xa5   :  { %v171_v38 = vpack.c.bf16 %v169_v36, %v169_v36 }
  0xa6   :  { %v172_v39 = vpack.c.bf16 %v170_v37, %v170_v37 }
  0xa7   :  { %309 = vmatmul.bf16.vlgmr.msra.gmra.mxu2 %v171_v38 }
  0xa8   :  { %322 = vmatmul.bf16.vlgmr.msra.gmra.mxu3 %v172_v39  ;;  %v154_v40 = vpop.f32.mrf.mxu0  ;;  %597 = vmatpush.bf16.msra.mxu2 %v1833_v10 }
  0xa9   :  { %v167_v41 = vpop.f32.mrf.mxu1  ;;  %610 = vmatpush.bf16.msra.mxu3 %v1910_v0 }
  0xac   :  { %598 = vmatpush.bf16.msra.mxu2 %v1837_v12 }
  0xad   :  { %611 = vmatpush.bf16.msra.mxu3 %v1913_v1 }
  0xb8   :  { %492 = vmatmul.bf16.vlgmr.msrb.gmra.mxu3 %v1594_v42 }
  0xb9   :  { %748 = vmatpush.bf16.msrb.mxu3 %v1896_v57 }
  0xbd   :  { %749 = vmatpush.bf16.msrb.mxu3 %v1899_v58 }
 0x12a   :  { %v310_v2 = vpop.f32.mrf.mxu2 }
 0x12b   :  { %v323_v3 = vpop.f32.mrf.mxu3 }
 0x12c   :  { %v324_v4 = vadd.f32 %v323_v3, %v310_v2 }
 0x12e   :  { %v327_v5 = vpack.c.bf16 %v324_v4, %v324_v4 }
 0x130   :  { %1393 = vmatmul.msk.bf16.vlgmr.msrb.gmra.mxu0 %vm386_vm1, %v327_v5  ;;  %1394 = vmatmul.msk.bf16.vlgmr.msrb.gmra.mxu1 %vm386_vm1, %v327_v5 }
 0x131   :  { %1395 = vmatmul.msk.bf16.vlgmr.msrb.gmra.mxu2 %vm386_vm1, %v327_v5  ;;  %623 = vmatpush.bf16.msrb.mxu0 %v1896_v57 }
 0x132   :  { %v312_v6 = vpop.f32.mrf.mxu2  ;;  %722 = vmatpush.bf16.msrb.mxu1 %v1833_v10  ;;  %735 = vmatpush.bf16.msrb.mxu2 %v1910_v0 }
 0x133   :  { %v325_v7 = vpop.f32.mrf.mxu3 }
 0x135   :  { %624 = vmatpush.bf16.msrb.mxu0 %v1899_v58 }
 0x136   :  { %723 = vmatpush.bf16.msrb.mxu1 %v1837_v12  ;;  %736 = vmatpush.bf16.msrb.mxu2 %v1913_v1 }
 0x13b   :  { %v493_v8 = vpop.f32.mrf.mxu3 }
 0x140   :  { %518 = vmatmul.bf16.vlgmr.msra.gmra.mxu1 %v1594_v42  ;;  %505 = vmatmul.bf16.vlgmr.msra.gmra.mxu0 %v1594_v42 }
 0x141   :  { %840 = vmatpush.bf16.msra.mxu0 %v1833_v10  ;;  %853 = vmatpush.bf16.msra.mxu1 %v1910_v0 }
 0x143   :  { %v495_v9 = vpop.f32.mrf.mxu3 }
 0x145   :  { %841 = vmatpush.bf16.msra.mxu0 %v1837_v12  ;;  %854 = vmatpush.bf16.msra.mxu1 %v1913_v1 }
 0x1ad   :  { %v409_v14 = vpop.f32.mrf.mxu0  ;;  %v1936_v15 = vpop.f32.mrf.mxu1 }
 0x1ae   :  { %v1938_v16 = vadd.f32 %v409_v14, %v340_v13 }
 0x1b0   :  { %v523_v17 = vadd.f32 %v493_v8, %v1938_v16 }
 0x1b2   :  { %v1408_v18 = vmul.f32 -1.442695, %v523_v17 }
 0x1b4   :  { %v1941_v19 = vpop.f32.mrf.mxu2  ;;  %1534 = vpow2.f32 %v1408_v18 }
 0x1b5   :  { %v411_v20 = vpop.f32.mrf.mxu0  ;;  %v424_v21 = vpop.f32.mrf.mxu1 }
 0x1ba   :  { %v1535_v22 = vpop.eup %1534 }
 0x1bb   :  { %v527_v23 = vadd.f32 1.0, %v1535_v22 }
 0x1bc   :  { %v437_v24 = vpop.f32.mrf.mxu2 }
 0x1bd   :  { %v519_v25 = vpop.f32.mrf.mxu1  ;;  %1536 = vrcp.f32 %v527_v23  ;;  %v506_v26 = vpop.f32.mrf.mxu0  ;;  %v539_v33 = vand.u32 2147483648, %v527_v23  ;;  %v537_v35 = vand.u32 2147483647, %v527_v23  ;;  %vm533_vm3 = vweird.f32 %v527_v23 }
 0x1be   :  { %v568_v36 = vadd.f32 %v1946_v31, %v519_v25 }
 0x1bf   :  { %v540_v38 = vor.u32 1.1754944e-38, %v539_v33  ;;  %vm538_vm5 = vcmp.eq.f32.partialorder %v537_v35, 8.507059e+37  ;;  %v341_v35 = vperm.slane %v1933_v11, 1 }
 0x1c3   :  { %v1537_v27 = vpop.eup %1536 }
 0x1c4   :  { %v529_v28 = vmul.f32 %v1537_v27, %v527_v23  ;;  %vm534_vm2 = vweird.f32 %v1537_v27 }
 0x1c5   :  { %v521_v29 = vpop.f32.mrf.mxu1  ;;  %v508_v30 = vpop.f32.mrf.mxu0  ;;  %vm535_vm4 = vmor %vm533_vm3, %vm534_vm2 }
 0x1c6   :  { %v530_v32 = vsub.f32 1.0, %v529_v28 }
 0x1c8   :  { %v531_v34 = vmul.f32 %v1537_v27, %v530_v32 }
 0x1ca   :  { %v532_v37 = vadd.f32 %v1537_v27, %v531_v34 }
 0x1cc   :  { %v536_v39 = vsel %vm535_vm4, %v1537_v27, %v532_v37  ;;  %vm699_vm4 = vcmask 850944  }
 0x1cd   :  { %v541_v40 = vsel %vm538_vm5, %v540_v38, %v536_v39 }
 0x1ce   :  { %v569_v41 = vmul.f32 %v568_v36, %v541_v40  ;;  %v1971_v36 = vadd.f32 %v1936_v15, %v341_v35 }
 0x1d0   :  { %571 = vrot.lane.b32.xlu0 %v569_v41, %s1595_s2 }
 0x1d8   :  { %544 = vrot.lane.b32.xlu0 %v506_v26, %s1596_s20 }
 0x242   :  { %v572_v42 = vpop.permute.xlu0 %571 }
 0x243   :  { %v574_v43 = vadd.f32 %v572_v42, %v1938_v16 }
 0x245   :  { %1538 = vtanh.f32 %v574_v43 }
 0x24a   :  { %v545_v45 = vpop.permute.xlu0 %544 }
 0x24b   :  { %v1539_v44 = vpop.eup %1538  ;;  %v547_v46 = vadd.f32 %v545_v45, %v1938_v16 }
 0x24c   :  { %578 = vrot.lane.b32.xlu1 %v1539_v44, %s1597_s21 }
 0x24d   :  { %v1409_v47 = vmul.f32 -1.442695, %v547_v46 }
 0x24f   :  { %1540 = vpow2.f32 %v1409_v47 }
 0x255   :  { %v1541_v48 = vpop.eup %1540 }
 0x256   :  { %v551_v49 = vadd.f32 1.0, %v1541_v48 }
 0x258   :  { %1542 = vrcp.f32 %v551_v49  ;;  %v563_v55 = vand.u32 2147483648, %v551_v49  ;;  %vm557_vm7 = vweird.f32 %v551_v49  ;;  %v561_v56 = vand.u32 2147483647, %v551_v49 }
 0x25a   :  { %v564_v60 = vor.u32 1.1754944e-38, %v563_v55  ;;  %vm562_vm9 = vcmp.eq.f32.partialorder %v561_v56, 8.507059e+37 }
 0x25e   :  { %v1543_v50 = vpop.eup %1542 }
 0x25f   :  { %v553_v51 = vmul.f32 %v1543_v50, %v551_v49  ;;  %vm558_vm6 = vweird.f32 %v1543_v50 }
 0x260   :  { %vm559_vm8 = vmor %vm557_vm7, %vm558_vm6 }
 0x261   :  { %v554_v52 = vsub.f32 1.0, %v553_v51 }
 0x263   :  { %v555_v53 = vmul.f32 %v1543_v50, %v554_v52 }
 0x265   :  { %v556_v54 = vadd.f32 %v1543_v50, %v555_v53 }
 0x267   :  { %v560_v59 = vsel %vm559_vm8, %v1543_v50, %v556_v54 }
 0x268   :  { %v565_v62 = vsel %vm562_vm9, %v564_v60, %v560_v59 }
 0x269   :  { %v576_v63 = vsub.f32 1.0, %v565_v62  ;;  %v582_v4 = vmul.f32 0.0, %v565_v62 }
 0x2be   :  { %v579_v2 = vpop.permute.xlu1 %578 }
 0x2bf   :  { %v581_v3 = vmul.f32 %v579_v2, %v576_v63 }
 0x2c1   :  { %v583_v5 = vadd.f32 %v582_v4, %v581_v3 }
 0x2c3   :  { %v584_v6 = vpack.c.bf16 %v583_v5, %v583_v5 }
 0x2c5   :  { %586 = vrot.lane.b32.xlu1 %v584_v6, %s1597_s21 }
 0x337   :  { %v587_v7 = vpop.permute.xlu1 %586 }
 0x338   :  { %1410 = vmatmul.msk.bf16.vlgmr.msra.gmra.mxu2 %vm471_vm10, %v587_v7  ;;  %1411 = vmatmul.msk.bf16.vlgmr.msra.gmra.mxu3 %vm471_vm10, %v587_v7 }
 0x339   :  { %1412 = vmatmul.msk.bf16.vlgmr.msrb.gmra.mxu0 %vm471_vm10, %v587_v7  ;;  %866 = vmatpush.bf16.msra.mxu2 %v1896_v57 }
 0x33a   :  { %989 = vmatpush.bf16.msra.mxu3 %v1833_v10  ;;  %1002 = vmatpush.bf16.msrb.mxu0 %v1910_v0 }
 0x33d   :  { %867 = vmatpush.bf16.msra.mxu2 %v1899_v58 }
 0x33e   :  { %990 = vmatpush.bf16.msra.mxu3 %v1837_v12  ;;  %1003 = vmatpush.bf16.msrb.mxu0 %v1913_v1 }
 0x3b6   :  { %v626_v8 = vpop.f32.mrf.mxu0 }
 0x3b7   :  { %v678_v17 = vadd.f32 %v1946_v31, %v626_v8 }
 0x3bb   :  { %v600_v9 = vpop.f32.mrf.mxu2  ;;  %v613_v13 = vpop.f32.mrf.mxu3 }
 0x3bc   :  { %655 = vrot.lane.b32.xlu1 %v613_v13, %s1598_s22  ;;  %631 = vrot.lane.b32.xlu2 %v600_v9, %s1599_s23 }
 0x3be   :  { %v628_v14 = vpop.f32.mrf.mxu0 }
 0x3c3   :  { %v602_v10 = vpop.f32.mrf.mxu2  ;;  %v615_v18 = vpop.f32.mrf.mxu3 }
 0x3c4   :  { %704 = vrot.lane.b32.xlu1 %v583_v5, %s1599_s23  ;;  %680 = vrot.lane.b32.xlu2 %v678_v17, %s1599_s23 }
 0x416   :  { %v632_v12 = vpop.permute.xlu2 %631 }
 0x417   :  { %v634_v0 = vadd.f32 %v632_v12, %v1938_v16 }
 0x419   :  { %v1413_v1 = vmul.f32 -1.442695, %v634_v0 }
 0x41b   :  { %1544 = vpow2.f32 %v1413_v1 }
 0x41e   :  { %v681_v33 = vpop.permute.xlu2 %680 }
 0x421   :  { %v1545_v20 = vpop.eup %1544 }
 0x422   :  { %v638_v21 = vadd.f32 1.0, %v1545_v20 }
 0x424   :  { %1546 = vrcp.f32 %v638_v21  ;;  %v650_v25 = vand.u32 2147483648, %v638_v21  ;;  %v648_v27 = vand.u32 2147483647, %v638_v21  ;;  %vm644_vm12 = vweird.f32 %v638_v21 }
 0x426   :  { %v651_v29 = vor.u32 1.1754944e-38, %v650_v25  ;;  %vm649_vm14 = vcmp.eq.f32.partialorder %v648_v27, 8.507059e+37 }
 0x42a   :  { %v1547_v22 = vpop.eup %1546 }
 0x42b   :  { %v640_v23 = vmul.f32 %v1547_v22, %v638_v21  ;;  %vm645_vm11 = vweird.f32 %v1547_v22 }
 0x42c   :  { %vm646_vm13 = vmor %vm644_vm12, %vm645_vm11 }
 0x42d   :  { %v641_v24 = vsub.f32 1.0, %v640_v23 }
 0x42e   :  { %v656_v42 = vpop.permute.xlu1 %655 }
 0x42f   :  { %v642_v26 = vmul.f32 %v1547_v22, %v641_v24  ;;  %v658_v43 = vadd.f32 %v656_v42, %v1938_v16 }
 0x431   :  { %v643_v28 = vadd.f32 %v1547_v22, %v642_v26  ;;  %v1414_v44 = vmul.f32 -1.442695, %v658_v43 }
 0x433   :  { %v647_v30 = vsel %vm646_vm13, %v1547_v22, %v643_v28 }
 0x434   :  { %v652_v32 = vsel %vm649_vm14, %v651_v29, %v647_v30 }
 0x435   :  { %v683_v34 = vmul.f32 %v681_v33, %v652_v32 }
 0x436   :  { %v705_v60 = vpop.permute.xlu1 %704 }
 0x437   :  { %685 = vrot.lane.b32.xlu0 %v683_v34, %s1595_s2 }
 0x4a9   :  { %v686_v37 = vpop.permute.xlu0 %685 }
 0x4aa   :  { %v688_v38 = vadd.f32 %v686_v37, %v1938_v16  ;;  %v689_v39 = vadd.f32 %v686_v37, %v1971_v36 }
 0x4ac   :  { %1548 = vtanh.f32 %v688_v38 }
 0x4ad   :  { %1550 = vtanh.f32 %v689_v39 }
 0x4ae   :  { %1552 = vpow2.f32 %v1414_v44 }
 0x4b2   :  { %v1549_v40 = vpop.eup %1548 }
 0x4b3   :  { %v1551_v41 = vpop.eup %1550  ;;  %695 = vrot.lane.b32.xlu2 %v1549_v40, %s1597_s21 }
 0x4b4   :  { %697 = vrot.lane.b32.xlu0 %v1551_v41, %s1597_s21  ;;  %v1553_v15 = vpop.eup %1552 }
 0x4b5   :  { %v662_v45 = vadd.f32 1.0, %v1553_v15 }
 0x4b7   :  { %1554 = vrcp.f32 %v662_v45  ;;  %v674_v51 = vand.u32 2147483648, %v662_v45  ;;  %vm668_vm1 = vweird.f32 %v662_v45  ;;  %v672_v52 = vand.u32 2147483647, %v662_v45 }
 0x4b9   :  { %v675_v54 = vor.u32 1.1754944e-38, %v674_v51  ;;  %vm673_vm3 = vcmp.eq.f32.partialorder %v672_v52, 8.507059e+37 }
 0x4bd   :  { %v1555_v46 = vpop.eup %1554 }
 0x4be   :  { %v664_v47 = vmul.f32 %v1555_v46, %v662_v45  ;;  %vm669_vm15 = vweird.f32 %v1555_v46 }
 0x4bf   :  { %vm670_vm2 = vmor %vm668_vm1, %vm669_vm15 }
 0x4c0   :  { %v665_v48 = vsub.f32 1.0, %v664_v47 }
 0x4c2   :  { %v666_v49 = vmul.f32 %v1555_v46, %v665_v48 }
 0x4c4   :  { %v667_v50 = vadd.f32 %v1555_v46, %v666_v49 }
 0x4c6   :  { %v671_v53 = vsel %vm670_vm2, %v1555_v46, %v667_v50 }
 0x4c7   :  { %v676_v55 = vsel %vm673_vm3, %v675_v54, %v671_v53 }
 0x4c8   :  { %v692_v16 = vsub.f32 1.0, %v676_v55  ;;  %v707_v63 = vmul.f32 %v705_v60, %v676_v55 }
 0x50d   :  { %v696_v56 = vpop.permute.xlu2 %695 }
 0x526   :  { %v698_v59 = vpop.permute.xlu0 %697 }
 0x527   :  { %v700_v62 = vsel %vm699_vm4, %v696_v56, %v698_v59  ;;  %v1999_v59 = vld [vmem:[%s2076_s7] ss:$0 sm:$0xff]  ;;  %s1605_s7 = smov 56  }
 0x528   :  { %v702_v2 = vmul.f32 %v700_v62, %v692_v16 }
 0x52a   :  { %v708_v3 = vadd.f32 %v707_v63, %v702_v2 }
 0x52c   :  { %v709_v4 = vpack.c.bf16 %v708_v3, %v708_v3 }
 0x52e   :  { %711 = vrot.lane.b32.xlu2 %v709_v4, %s1600_s3 }
 0x588   :  { %v712_v5 = vpop.permute.xlu2 %711 }
 0x589   :  { %1415 = vmatmul.msk.bf16.vlgmr.msrb.gmra.mxu1 %vm471_vm10, %v712_v5  ;;  %1416 = vmatmul.msk.bf16.vlgmr.msrb.gmra.mxu2 %vm471_vm10, %v712_v5 }
 0x58a   :  { %1417 = vmatmul.msk.bf16.vlgmr.msrb.gmra.mxu3 %vm471_vm10, %v712_v5  ;;  %1015 = vmatpush.bf16.msrb.mxu1 %v1896_v57 }
 0x58e   :  { %1016 = vmatpush.bf16.msrb.mxu1 %v1899_v58 }
 0x606   :  { %v725_v6 = vpop.f32.mrf.mxu1 }
 0x607   :  { %756 = vrot.lane.b32.xlu0 %v725_v6, %s1601_s24 }
 0x60c   :  { %v738_v7 = vpop.f32.mrf.mxu2 }
 0x60d   :  { %v751_v8 = vpop.f32.mrf.mxu3 }
 0x60e   :  { %v803_v9 = vadd.f32 %v1946_v31, %v751_v8  ;;  %v727_v13 = vpop.f32.mrf.mxu1 }
 0x60f   :  { %780 = vrot.lane.b32.xlu0 %v738_v7, %s1602_s25 }
 0x610   :  { %805 = vrot.lane.b32.xlu1 %v803_v9, %s1601_s24 }
 0x614   :  { %v740_v14 = vpop.f32.mrf.mxu2 }
 0x615   :  { %v753_v17 = vpop.f32.mrf.mxu3 }
 0x679   :  { %v757_v10 = vpop.permute.xlu0 %756 }
 0x67a   :  { %v759_v57 = vadd.f32 %v757_v10, %v1971_v36 }
 0x67c   :  { %v1418_v18 = vmul.f32 -1.442695, %v759_v57 }
 0x67e   :  { %1556 = vpow2.f32 %v1418_v18 }
 0x681   :  { %v781_v33 = vpop.permute.xlu0 %780 }
 0x682   :  { %v806_v26 = vpop.permute.xlu1 %805  ;;  %v783_v34 = vadd.f32 %v781_v33, %v1971_v36 }
 0x684   :  { %v1557_v58 = vpop.eup %1556  ;;  %v1419_v35 = vmul.f32 -1.442695, %v783_v34 }
 0x685   :  { %v763_v12 = vadd.f32 1.0, %v1557_v58 }
 0x687   :  { %1558 = vrcp.f32 %v763_v12  ;;  %v775_v21 = vand.u32 2147483648, %v763_v12  ;;  %v773_v22 = vand.u32 2147483647, %v763_v12  ;;  %vm769_vm6 = vweird.f32 %v763_v12 }
 0x689   :  { %v776_v24 = vor.u32 1.1754944e-38, %v775_v21  ;;  %vm774_vm8 = vcmp.eq.f32.partialorder %v773_v22, 8.507059e+37  ;;  %v342_v21 = vperm.slane %v1933_v11, 2 }
 0x68d   :  { %v1559_v0 = vpop.eup %1558 }
 0x68e   :  { %v765_v1 = vmul.f32 %v1559_v0, %v763_v12  ;;  %vm770_vm5 = vweird.f32 %v1559_v0 }
 0x68f   :  { %vm771_vm7 = vmor %vm769_vm6, %vm770_vm5 }
 0x690   :  { %v766_v20 = vsub.f32 1.0, %v765_v1 }
 0x692   :  { %v767_v31 = vmul.f32 %v1559_v0, %v766_v20 }
 0x694   :  { %v768_v23 = vadd.f32 %v1559_v0, %v767_v31  ;;  %v2007_v31 = vadd.f32 %v1941_v19, %v342_v21 }
 0x696   :  { %v772_v25 = vsel %vm771_vm7, %v1559_v0, %v768_v23 }
 0x697   :  { %v777_v27 = vsel %vm774_vm8, %v776_v24, %v772_v25 }
 0x698   :  { %v808_v28 = vmul.f32 %v806_v26, %v777_v27 }
 0x69a   :  { %810 = vrot.lane.b32.xlu2 %v808_v28, %s1595_s2 }
 0x6a2   :  { %822 = vrot.lane.b32.xlu2 %v708_v3, %s1599_s23 }
 0x6f4   :  { %v811_v29 = vpop.permute.xlu2 %810 }
 0x6f5   :  { %v813_v30 = vadd.f32 %v811_v29, %v1971_v36 }
 0x6f7   :  { %1560 = vtanh.f32 %v813_v30 }
 0x6f8   :  { %1562 = vpow2.f32 %v1419_v35 }
 0x6fc   :  { %v823_v48 = vpop.permute.xlu2 %822 }
 0x6fd   :  { %v1561_v32 = vpop.eup %1560 }
 0x6fe   :  { %817 = vrot.lane.b32.xlu1 %v1561_v32, %s1597_s21  ;;  %v1563_v37 = vpop.eup %1562 }
 0x6ff   :  { %v787_v38 = vadd.f32 1.0, %v1563_v37 }
 0x701   :  { %1564 = vrcp.f32 %v787_v38  ;;  %v799_v44 = vand.u32 2147483648, %v787_v38  ;;  %vm793_vm11 = vweird.f32 %v787_v38  ;;  %v797_v15 = vand.u32 2147483647, %v787_v38 }
 0x703   :  { %v800_v46 = vor.u32 1.1754944e-38, %v799_v44  ;;  %vm798_vm13 = vcmp.eq.f32.partialorder %v797_v15, 8.507059e+37 }
 0x707   :  { %v1565_v39 = vpop.eup %1564 }
 0x708   :  { %v789_v40 = vmul.f32 %v1565_v39, %v787_v38  ;;  %vm794_vm9 = vweird.f32 %v1565_v39 }
 0x709   :  { %vm795_vm12 = vmor %vm793_vm11, %vm794_vm9 }
 0x70a   :  { %v790_v41 = vsub.f32 1.0, %v789_v40 }
 0x70c   :  { %v791_v42 = vmul.f32 %v1565_v39, %v790_v41 }
 0x70e   :  { %v792_v43 = vadd.f32 %v1565_v39, %v791_v42 }
 0x710   :  { %v796_v45 = vsel %vm795_vm12, %v1565_v39, %v792_v43  ;;  %vm978_vm12 = vcmask 130048  }
 0x711   :  { %v801_v47 = vsel %vm798_vm13, %v800_v46, %v796_v45 }
 0x712   :  { %v815_v49 = vsub.f32 1.0, %v801_v47  ;;  %v825_v51 = vmul.f32 %v823_v48, %v801_v47 }
 0x770   :  { %v818_v50 = vpop.permute.xlu1 %817 }
 0x771   :  { %v820_v52 = vmul.f32 %v818_v50, %v815_v49 }
 0x773   :  { %v826_v53 = vadd.f32 %v825_v51, %v820_v52 }
 0x775   :  { %v827_v54 = vpack.c.bf16 %v826_v53, %v826_v53 }
 0x777   :  { %829 = vrot.lane.b32.xlu0 %v827_v54, %s1603_s26 }
 0x7e9   :  { %v830_v55 = vpop.permute.xlu0 %829 }
 0x7ea   :  { %1420 = vmatmul.msk.bf16.vlgmr.msra.gmra.mxu0 %vm471_vm10, %v830_v55  ;;  %1421 = vmatmul.msk.bf16.vlgmr.msra.gmra.mxu1 %vm471_vm10, %v830_v55 }
 0x7eb   :  { %1422 = vmatmul.msk.bf16.vlgmr.msra.gmra.mxu2 %vm471_vm10, %v830_v55 }
 0x867   :  { %v843_v16 = vpop.f32.mrf.mxu0  ;;  %v856_v56 = vpop.f32.mrf.mxu1 }
 0x868   :  { %874 = vrot.lane.b32.xlu1 %v843_v16, %s1603_s26 }
 0x86e   :  { %v869_v60 = vpop.f32.mrf.mxu2 }
 0x86f   :  { %v942_v62 = vadd.f32 %v1999_v59, %v869_v60  ;;  %v845_v63 = vpop.f32.mrf.mxu0  ;;  %v858_v2 = vpop.f32.mrf.mxu1 }
 0x870   :  { %898 = vrot.lane.b32.xlu1 %v856_v56, %s1604_s28 }
 0x871   :  { %944 = vrot.lane.b32.xlu2 %v942_v62, %s1603_s26 }
 0x876   :  { %v871_v3 = vpop.f32.mrf.mxu2 }
 0x8cb   :  { %v945_v0 = vpop.permute.xlu2 %944 }
 0x8da   :  { %v875_v4 = vpop.permute.xlu1 %874 }
 0x8db   :  { %v877_v5 = vadd.f32 %v875_v4, %v1971_v36 }
 0x8dd   :  { %v1423_v6 = vmul.f32 -1.442695, %v877_v5 }
 0x8df   :  { %1566 = vpow2.f32 %v1423_v6 }
 0x8e2   :  { %v899_v25 = vpop.permute.xlu1 %898 }
 0x8e3   :  { %v901_v26 = vadd.f32 %v899_v25, %v1971_v36  ;;  %v902_v27 = vadd.f32 %v899_v25, %v2007_v31 }
 0x8e5   :  { %v1567_v7 = vpop.eup %1566  ;;  %v1424_v28 = vmul.f32 -1.442695, %v901_v26  ;;  %v1425_v29 = vmul.f32 -1.442695, %v902_v27 }
 0x8e6   :  { %v881_v8 = vadd.f32 1.0, %v1567_v7 }
 0x8e8   :  { %1568 = vrcp.f32 %v881_v8  ;;  %v893_v17 = vand.u32 2147483648, %v881_v8  ;;  %v891_v57 = vand.u32 2147483647, %v881_v8  ;;  %vm887_vm15 = vweird.f32 %v881_v8 }
 0x8ea   :  { %v894_v58 = vor.u32 1.1754944e-38, %v893_v17  ;;  %vm892_vm2 = vcmp.eq.f32.partialorder %v891_v57, 8.507059e+37 }
 0x8ee   :  { %v1569_v9 = vpop.eup %1568 }
 0x8ef   :  { %v883_v13 = vmul.f32 %v1569_v9, %v881_v8  ;;  %vm888_vm14 = vweird.f32 %v1569_v9 }
 0x8f0   :  { %vm889_vm1 = vmor %vm887_vm15, %vm888_vm14 }
 0x8f1   :  { %v884_v14 = vsub.f32 1.0, %v883_v13 }
 0x8f3   :  { %v885_v10 = vmul.f32 %v1569_v9, %v884_v14 }
 0x8f5   :  { %v886_v18 = vadd.f32 %v1569_v9, %v885_v10 }
 0x8f7   :  { %v890_v12 = vsel %vm889_vm1, %v1569_v9, %v886_v18 }
 0x8f8   :  { %v895_v1 = vsel %vm892_vm2, %v894_v58, %v890_v12 }
 0x8f9   :  { %v947_v20 = vmul.f32 %v945_v0, %v895_v1 }
 0x8fb   :  { %949 = vrot.lane.b32.xlu0 %v947_v20, %s1595_s2 }
 0x903   :  { %963 = vrot.lane.b32.xlu0 %v826_v53, %s1599_s23 }
 0x96d   :  { %v950_v22 = vpop.permute.xlu0 %949 }
 0x96e   :  { %v952_v23 = vadd.f32 %v950_v22, %v2007_v31 }
 0x970   :  { %1570 = vtanh.f32 %v952_v23 }
 0x971   :  { %1572 = vpow2.f32 %v1424_v28 }
 0x972   :  { %1574 = vpow2.f32 %v1425_v29 }
 0x975   :  { %v964_v52 = vpop.permute.xlu0 %963 }
 0x976   :  { %v1571_v24 = vpop.eup %1570 }
 0x977   :  { %957 = vrot.lane.b32.xlu2 %v1571_v24, %s1597_s21  ;;  %v1573_v11 = vpop.eup %1572 }
 0x978   :  { %v1575_v30 = vpop.eup %1574  ;;  %v909_v19 = vadd.f32 1.0, %v1573_v11 }
 0x979   :  { %v910_v32 = vadd.f32 1.0, %v1575_v30 }
 0x97a   :  { %1576 = vrcp.f32 %v909_v19  ;;  %vm916_vm5 = vweird.f32 %v909_v19  ;;  %v922_v43 = vand.u32 2147483648, %v909_v19  ;;  %v920_v15 = vand.u32 2147483647, %v909_v19 }
 0x97b   :  { %1578 = vrcp.f32 %v910_v32  ;;  %v937_v44 = vand.u32 2147483648, %v910_v32  ;;  %vm931_vm7 = vweird.f32 %v910_v32  ;;  %v935_v45 = vand.u32 2147483647, %v910_v32 }
 0x97c   :  { %v923_v48 = vor.u32 1.1754944e-38, %v922_v43  ;;  %vm921_vm9 = vcmp.eq.f32.partialorder %v920_v15, 8.507059e+37  ;;  %v1516_v15 = vld [vmem:[%s2078_s9 + $0x28] sm:$0xff] }
 0x97d   :  { %v938_v49 = vor.u32 1.1754944e-38, %v937_v44  ;;  %vm936_vm11 = vcmp.eq.f32.partialorder %v935_v45, 8.507059e+37 }
 0x980   :  { %v1577_v33 = vpop.eup %1576 }
 0x981   :  { %v1579_v34 = vpop.eup %1578  ;;  %v912_v35 = vmul.f32 %v1577_v33, %v909_v19  ;;  %vm917_vm3 = vweird.f32 %v1577_v33 }
 0x982   :  { %v927_v37 = vmul.f32 %v1579_v34, %v910_v32  ;;  %vm932_vm4 = vweird.f32 %v1579_v34  ;;  %vm918_vm6 = vmor %vm916_vm5, %vm917_vm3 }
 0x983   :  { %v913_v38 = vsub.f32 1.0, %v912_v35  ;;  %vm933_vm8 = vmor %vm931_vm7, %vm932_vm4  ;;  %vm1094_vm4 = vcmask 588800  }
 0x984   :  { %v928_v39 = vsub.f32 1.0, %v927_v37 }
 0x985   :  { %v914_v40 = vmul.f32 %v1577_v33, %v913_v38 }
 0x986   :  { %v929_v36 = vmul.f32 %v1579_v34, %v928_v39 }
 0x987   :  { %v915_v41 = vadd.f32 %v1577_v33, %v914_v40  ;;  %v1518_v40 = vld [vmem:[%s2078_s9 + $0x38] sm:$0xff] }
 0x988   :  { %v930_v42 = vadd.f32 %v1579_v34, %v929_v36  ;;  %1167 = vmatpush.bf16.msrb.mxu2 %v1518_v40 }
 0x989   :  { %v919_v46 = vsel %vm918_vm6, %v1577_v33, %v915_v41  ;;  %v1517_v41 = vld [vmem:[%s2078_s9 + $0x30] sm:$0xff] }
 0x98a   :  { %v934_v47 = vsel %vm933_vm8, %v1579_v34, %v930_v42  ;;  %v924_v50 = vsel %vm921_vm9, %v923_v48, %v919_v46  ;;  %v1510_v46 = vld [vmem:[%s2079_s8] sm:$0xff] }
 0x98b   :  { %v939_v51 = vsel %vm936_vm11, %v938_v49, %v934_v47  ;;  %v954_v53 = vsub.f32 1.0, %v924_v50  ;;  %v966_v16 = vmul.f32 %v964_v52, %v924_v50  ;;  %v1515_v48 = vld [vmem:[%s2078_s9 + $0x20] sm:$0xff]  ;;  %v1514_v50 = vld [vmem:[%s2078_s9 + $0x18] sm:$0xff] }
 0x98c   :  { %v955_v54 = vsub.f32 1.0, %v939_v51  ;;  %v967_v56 = vmul.f32 %v964_v52, %v939_v51  ;;  %1168 = vmatpush.bf16.msrb.mxu2 %v1517_v41 }
 0x990   :  { %1169 = vmatpush.bf16.msrb.mxu2 %v1516_v15 }
 0x994   :  { %1170 = vmatpush.bf16.msrb.mxu2 %v1515_v48 }
 0x998   :  { %1171 = vmatpush.bf16.msrb.mxu2 %v1514_v50 }
 0x9d1   :  { %v958_v55 = vpop.permute.xlu2 %957 }
 0x9d2   :  { %v960_v60 = vmul.f32 %v958_v55, %v954_v53  ;;  %v961_v62 = vmul.f32 %v958_v55, %v955_v54  ;;  %v1513_v54 = vld [vmem:[%s2078_s9 + $0x10] sm:$0xff] }
 0x9d3   :  { %1172 = vmatpush.bf16.msrb.mxu2 %v1513_v54 }
 0x9d4   :  { %v968_v63 = vadd.f32 %v966_v16, %v960_v60  ;;  %v969_v2 = vadd.f32 %v967_v56, %v961_v62  ;;  %v1512_v62 = vld [vmem:[%s2078_s9 + $0x8] sm:$0xff] }
 0x9d6   :  { %v970_v3 = vpack.c.bf16 %v968_v63, %v968_v63  ;;  %v971_v4 = vpack.c.bf16 %v969_v2, %v969_v2 }
 0x9d7   :  { %1173 = vmatpush.bf16.msrb.mxu2 %v1512_v62 }
 0x9d8   :  { %974 = vrot.lane.b32.xlu1 %v970_v3, %s1601_s24  ;;  %976 = vrot.lane.b32.xlu2 %v971_v4, %s1601_s24 }
 0xa32   :  { %v977_v5 = vpop.permute.xlu2 %976 }
 0xa4a   :  { %v975_v6 = vpop.permute.xlu1 %974 }
 0xa4b   :  { %v979_v7 = vsel %vm978_vm12, %v975_v6, %v977_v5  ;;  %v1511_v6 = vld [vmem:[%s2078_s9] sm:$0xff] }
 0xa4c   :  { %1426 = vmatmul.msk.bf16.vlgmr.msra.gmra.mxu3 %vm471_vm10, %v979_v7  ;;  %1427 = vmatmul.msk.bf16.vlgmr.msrb.gmra.mxu0 %vm471_vm10, %v979_v7 }
 0xa4d   :  { %1428 = vmatmul.msk.bf16.vlgmr.msrb.gmra.mxu1 %vm471_vm10, %v979_v7  ;;  %1174 = vmatpush.bf16.msrb.mxu2 %v1511_v6 }
 0xa50   :  { %1175 = vmatmul.bf16.vlgmr.msrb.gmra.mxu2 %v1801_v61 }
 0xac9   :  { %v1005_v8 = vpop.f32.mrf.mxu0 }
 0xaca   :  { %v1018_v9 = vpop.f32.mrf.mxu1 }
 0xacb   :  { %v1070_v13 = vadd.f32 %v1999_v59, %v1018_v9 }
 0xacd   :  { %1072 = vrot.lane.b32.xlu1 %v1070_v13, %s1600_s3 }
 0xacf   :  { %v992_v14 = vpop.f32.mrf.mxu3 }
 0xad0   :  { %1023 = vrot.lane.b32.xlu0 %v992_v14, %s1600_s3 }
 0xad1   :  { %v1007_v17 = vpop.f32.mrf.mxu0 }
 0xad2   :  { %v1020_v10 = vpop.f32.mrf.mxu1  ;;  %v1533_v17 = vld [vmem:[%s2080_s10] ss:$0 sm:$0xff] }
 0xad3   :  { %v1176_v13 = vpop.f32.mrf.mxu2 }
 0xad5   :  { %1090 = vrot.lane.b32.xlu1 %v968_v63, %s1599_s23 }
 0xad7   :  { %v994_v57 = vpop.f32.mrf.mxu3 }
 0xad8   :  { %1047 = vrot.lane.b32.xlu0 %v1005_v8, %s1605_s7 }
 0xadb   :  { %v1178_v14 = vpop.f32.mrf.mxu2 }
 0xb3f   :  { %v1073_v28 = vpop.permute.xlu1 %1072 }
 0xb42   :  { %v1024_v18 = vpop.permute.xlu0 %1023 }
 0xb43   :  { %v1026_v58 = vadd.f32 %v1024_v18, %v2007_v31 }
 0xb45   :  { %v1429_v12 = vmul.f32 -1.442695, %v1026_v58 }
 0xb47   :  { %1580 = vpow2.f32 %v1429_v12  ;;  %v1091_v60 = vpop.permute.xlu1 %1090 }
 0xb4a   :  { %v1048_v33 = vpop.permute.xlu0 %1047 }
 0xb4b   :  { %v1050_v34 = vadd.f32 %v1048_v33, %v2007_v31 }
 0xb4d   :  { %v1581_v0 = vpop.eup %1580  ;;  %v1430_v35 = vmul.f32 -1.442695, %v1050_v34 }
 0xb4e   :  { %v1030_v1 = vadd.f32 1.0, %v1581_v0 }
 0xb50   :  { %1582 = vrcp.f32 %v1030_v1  ;;  %v1042_v22 = vand.u32 2147483648, %v1030_v1  ;;  %v1040_v24 = vand.u32 2147483647, %v1030_v1  ;;  %vm1036_vm14 = vweird.f32 %v1030_v1 }
 0xb52   :  { %v1043_v26 = vor.u32 1.1754944e-38, %v1042_v22  ;;  %vm1041_vm1 = vcmp.eq.f32.partialorder %v1040_v24, 8.507059e+37 }
 0xb56   :  { %v1583_v59 = vpop.eup %1582 }
 0xb57   :  { %v1032_v20 = vmul.f32 %v1583_v59, %v1030_v1  ;;  %vm1037_vm13 = vweird.f32 %v1583_v59 }
 0xb58   :  { %vm1038_vm15 = vmor %vm1036_vm14, %vm1037_vm13 }
 0xb59   :  { %v1033_v21 = vsub.f32 1.0, %v1032_v20 }
 0xb5b   :  { %v1034_v23 = vmul.f32 %v1583_v59, %v1033_v21 }
 0xb5d   :  { %v1035_v25 = vadd.f32 %v1583_v59, %v1034_v23 }
 0xb5f   :  { %v1039_v27 = vsel %vm1038_vm15, %v1583_v59, %v1035_v25 }
 0xb60   :  { %v1044_v29 = vsel %vm1041_vm1, %v1043_v26, %v1039_v27 }
 0xb61   :  { %v1075_v11 = vmul.f32 %v1073_v28, %v1044_v29 }
 0xb63   :  { %1077 = vrot.lane.b32.xlu2 %v1075_v11, %s1595_s2 }
 0xb6b   :  { %1092 = vrot.lane.b32.xlu2 %v969_v2, %s1599_s23 }
 0xbbd   :  { %v1078_v30 = vpop.permute.xlu2 %1077 }
 0xbbe   :  { %v1080_v19 = vadd.f32 %v1078_v30, %v2007_v31  ;;  %v1102_v31 = vld [vmem:[%s2079_s8 + $0x8] sm:$0xf] }
 0xbbf   :  { %v1188_v42 = vunpack.c.l.b16 %v1102_v31 }
 0xbc0   :  { %1584 = vtanh.f32 %v1080_v19 }
 0xbc1   :  { %1586 = vpow2.f32 %v1430_v35  ;;  %v1190_v43 = vpack.c.b16 %v1188_v42, %v1188_v42 }
 0xbc3   :  { %v1196_v45 = vsel %vm390_vm0, %v1190_v43, 0 }
 0xbc4   :  { %1204 = vmatpush.bf16.msrb.mxu3 %v1196_v45 }
 0xbc5   :  { %v1093_v16 = vpop.permute.xlu2 %1092 }
 0xbc6   :  { %v1585_v32 = vpop.eup %1584  ;;  %v1095_v63 = vsel %vm1094_vm4, %v1091_v60, %v1093_v16 }
 0xbc7   :  { %1084 = vrot.lane.b32.xlu0 %v1585_v32, %s1597_s21  ;;  %v1587_v37 = vpop.eup %1586 }
 0xbc8   :  { %v1054_v38 = vadd.f32 1.0, %v1587_v37  ;;  %1205 = vmatpush.bf16.msrb.mxu3 %v1510_v46 }
 0xbca   :  { %1588 = vrcp.f32 %v1054_v38  ;;  %v1066_v51 = vand.u32 2147483648, %v1054_v38  ;;  %vm1060_vm0 = vweird.f32 %v1054_v38  ;;  %v1064_v52 = vand.u32 2147483647, %v1054_v38 }
 0xbcc   :  { %v1067_v55 = vor.u32 1.1754944e-38, %v1066_v51  ;;  %vm1065_vm5 = vcmp.eq.f32.partialorder %v1064_v52, 8.507059e+37 }
 0xbd0   :  { %v1589_v39 = vpop.eup %1588 }
 0xbd1   :  { %v1056_v36 = vmul.f32 %v1589_v39, %v1054_v38  ;;  %vm1061_vm2 = vweird.f32 %v1589_v39 }
 0xbd2   :  { %vm1062_vm3 = vmor %vm1060_vm0, %vm1061_vm2 }
 0xbd3   :  { %v1057_v44 = vsub.f32 1.0, %v1056_v36 }
 0xbd5   :  { %v1058_v47 = vmul.f32 %v1589_v39, %v1057_v44 }
 0xbd7   :  { %v1059_v49 = vadd.f32 %v1589_v39, %v1058_v47 }
 0xbd9   :  { %v1063_v53 = vsel %vm1062_vm3, %v1589_v39, %v1059_v49 }
 0xbda   :  { %v1068_v56 = vsel %vm1065_vm5, %v1067_v55, %v1063_v53 }
 0xbdb   :  { %v1082_v2 = vsub.f32 1.0, %v1068_v56  ;;  %v1097_v4 = vmul.f32 %v1095_v63, %v1068_v56 }
 0xc39   :  { %v1085_v3 = vpop.permute.xlu0 %1084 }
 0xc3a   :  { %v1087_v5 = vmul.f32 %v1085_v3, %v1082_v2 }
 0xc3c   :  { %v1098_v7 = vadd.f32 %v1097_v4, %v1087_v5 }
 0xc3e   :  { %v1099_v8 = vpack.c.bf16 %v1098_v7, %v1098_v7 }
 0xc40   :  { %1181 = vrot.lane.b32.xlu1 %v1099_v8, %s1599_s23 }
 0xcb2   :  { %v1182_v9 = vpop.permute.xlu1 %1181 }
 0xcb3   :  { %1467 = vmatmul.msk.bf16.vlgmr.msrb.gmra.mxu3 %vm471_vm10, %v1182_v9 }
 0xd36   :  { %v1207_v10 = vpop.f32.mrf.mxu3 }
 0xd37   :  { %v1208_v57 = vadd.f32 %v1207_v10, %v1176_v13 }
 0xd39   :  { %v1215_v18 = vadd.f32 %v1533_v17, %v1208_v57 }
 0xd3b   :  { %v1468_v58 = vmul.f32 -1.442695, %v1215_v18 }
 0xd3d   :  { %1590 = vpow2.f32 %v1468_v58 }
 0xd3e   :  { %v1209_v12 = vpop.f32.mrf.mxu3 }
 0xd43   :  { %v1591_v0 = vpop.eup %1590 }
 0xd44   :  { %v1219_v1 = vadd.f32 1.0, %v1591_v0 }
 0xd46   :  { %1592 = vrcp.f32 %v1219_v1  ;;  %v1231_v21 = vand.u32 2147483648, %v1219_v1  ;;  %v1229_v23 = vand.u32 2147483647, %v1219_v1  ;;  %vm1225_vm6 = vweird.f32 %v1219_v1 }
 0xd48   :  { %v1232_v25 = vor.u32 1.1754944e-38, %v1231_v21  ;;  %vm1230_vm8 = vcmp.eq.f32.partialorder %v1229_v23, 8.507059e+37 }
 0xd4c   :  { %v1593_v59 = vpop.eup %1592 }
 0xd4d   :  { %v1221_v61 = vmul.f32 %v1593_v59, %v1219_v1  ;;  %vm1226_vm10 = vweird.f32 %v1593_v59 }
 0xd4e   :  { %vm1227_vm7 = vmor %vm1225_vm6, %vm1226_vm10 }
 0xd4f   :  { %v1222_v20 = vsub.f32 1.0, %v1221_v61 }
 0xd51   :  { %v1223_v22 = vmul.f32 %v1593_v59, %v1222_v20 }
 0xd53   :  { %v1224_v24 = vadd.f32 %v1593_v59, %v1223_v22 }
 0xd55   :  { %v1228_v26 = vsel %vm1227_vm7, %v1593_v59, %v1224_v24 }
 0xd56   :  { %v1233_v27 = vsel %vm1230_vm8, %v1232_v25, %v1228_v26 }
 0xd57   :  { %1236 = vst.msk [vmem:[%s2081_s11] sm:$0xff] %vm978_vm12, %v1233_v27 }

</bundles_post_ra>
